<compile_context>
chip_gen: v7x
topology: tpu7x:2x2x1
jax: 0.10.0
libtpu: 0.0.40
codegen_flags: <defaults>
</compile_context>

<pallas_src>
import functools

import jax
import jax.numpy as jnp
import numpy as np
from jax import lax
from jax.experimental import pallas as pl
from jax.experimental.pallas import tpu as pltpu


def _round_up(x, m):
    return ((x + m - 1) // m) * m


# -----------------------------------------------------------------------------
# Kernel: processes TN rows (flattened T*B) per grid step.
# Weight-stack order: 0 kw1, 1 kw2, 2 qw1, 3 qw2, 4 pw1, 5 pw2 (same for bias).
# -----------------------------------------------------------------------------
def _switch_head_kernel(
    ar_ref,    # (TN, D)        autoregressive embedding rows (f32, zero-padded to D)
    sw_ref,    # (TN, S, D)     switch entity embeddings (f32 or bf16)
    aux_ref,   # (TN, S+2)      [legal mask | action_type_index | uniform] (f32)
    flag_ref,  # (1, 1) SMEM    1.0 iff the WHOLE mask sums to zero
    w_ref,     # (6, D, D)      stacked, zero-padded weights (f32 or bf16)
    b_ref,     # (6, 1, D)      stacked, zero-padded biases (f32)
    out_ref,   # (TN, 2S+1+A)   [logits | policy | idx(f32) | new ar embedding]
    *, ar_dim,
):
    f32 = jnp.float32
    TN, S, D = sw_ref.shape
    A = ar_dim
    mm = w_ref.dtype  # MXU operand dtype (f32 or bf16); accumulation stays f32

    def dense(x, i):  # x @ W_i + b_i with f32 accumulation
        return (jnp.dot(x.astype(mm), w_ref[i], preferred_element_type=f32)
                + b_ref[i])

    # ---- query_fc: Linear -> ReLU -> Linear (M = TN) ----
    ar = ar_ref[...].astype(f32)                                  # (TN, D)
    qh = jnp.maximum(dense(ar, 2), 0.0)
    query = dense(qh, 3)                                          # (TN, D) f32

    # ---- key_fc fused over slots: two matmuls with M = TN*S ----
    sw = sw_ref[...].reshape(TN * S, D)       # layout-preserving (D stays lanes)
    kh = jnp.maximum(dense(sw, 0), 0.0)
    keys = dense(kh, 1)                                           # (TN*S, D) f32
    keys3 = keys.reshape(TN, S, D)                                # (TN, S, D)

    # ---- switch_logits[n, s] = <query[n], keys[n, s]> ----
    logits = jnp.sum(query[:, None, :] * keys3, axis=-1)          # (TN, S)

    # ---- mask fixup (global all-zero flag from wrapper) + _legal_policy ----
    aux = aux_ref[...]                                            # (TN, S+2)
    mask = jnp.maximum(aux[:, :S], flag_ref[0, 0])
    legal = mask > 0.5
    l_min = jnp.min(logits, axis=-1, keepdims=True)
    lg = jnp.where(legal, logits, l_min)
    lg = lg - jnp.max(lg, axis=-1, keepdims=True)
    lg = lg * mask
    ex = jnp.where(legal, jnp.exp(lg), 0.0)
    denom = jnp.sum(ex, axis=-1, keepdims=True)
    # NOTE: rows whose own mask is all-zero while the global mask is not give
    # denom == 0 -> NaN policy; this matches the PyTorch/JAX reference.
    policy = ex * pl.reciprocal(denom, approx=False)              # EUP reciprocal
    # ---- multinomial(policy, 1) via inverse CDF; lane cumsum as (S,S) matmul
    row_i = lax.broadcasted_iota(jnp.int32, (S, S), 0)
    col_i = lax.broadcasted_iota(jnp.int32, (S, S), 1)
    cum_mat = (row_i <= col_i).astype(f32)
    cdf = jnp.dot(policy, cum_mat, preferred_element_type=f32)    # (TN, S) f32
    u = aux[:, S + 1:S + 2]                                       # (TN, 1)
    cnt = jnp.sum((cdf < u).astype(f32), axis=-1, keepdims=True)
    idx = jnp.minimum(cnt, float(S - 1)).astype(jnp.int32)        # (TN, 1)

    # ---- gather keys[n, idx[n], :] via one-hot select + sublane reduce ----
    slot = lax.broadcasted_iota(jnp.int32, (TN, S), 1)
    onehot = (slot == idx).astype(f32)                            # (TN, S)
    emb = jnp.sum(onehot[:, :, None] * keys3, axis=1)             # (TN, D)

    # ---- proj_switch: Linear -> ReLU -> Linear ----
    ph = jnp.maximum(dense(emb, 4), 0.0)
    proj = dense(ph, 5)                                           # (TN, D)

    # ---- gated residual: ar + (action_type_index == 1) * projected embedding
    valid = (aux[:, S:S + 1] == 1.0).astype(f32)                  # (TN, 1)
    ar_out = ar + valid * proj

    # ---- single merged output slab (one output DMA per block) ----
    out_ref[:, 0:S] = logits
    out_ref[:, S:2 * S] = policy
    out_ref[:, 2 * S:2 * S + 1] = idx.astype(f32)
    out_ref[:, 2 * S + 1:2 * S + 1 + A] = ar_out[:, :A]


# -----------------------------------------------------------------------------
# Wrapper
# -----------------------------------------------------------------------------
def switch_head_forward(action_type_index, autoregressive_embedding, switches,
                        switch_mask, uniform, params, block_rows=512,
                        use_bf16=False):
    T, B, A = autoregressive_embedding.shape
    S, E = switches.shape[2], switches.shape[3]
    K = params["kw2"].shape[1]
    QH = params["qw1"].shape[1]
    D = max(E, K, A, QH)          # common padded feature width for the weight stack
    N = T * B

    mm_dtype = jnp.bfloat16 if use_bf16 else jnp.float32

    # ---- stacked, zero-padded weights/biases (padding is exact: padded weight
    #      rows/cols are zero, so padded activation columns stay zero) ----
    def pad_w(w):
        din, dout = w.shape
        return jnp.pad(w.astype(jnp.float32), ((0, D - din), (0, D - dout)))

    def pad_b(b):
        b = b.astype(jnp.float32).reshape(1, -1)
        return jnp.pad(b, ((0, 0), (0, D - b.shape[-1])))

    worder = ("kw1", "kw2", "qw1", "qw2", "pw1", "pw2")
    border = ("kb1", "kb2", "qb1", "qb2", "pb1", "pb2")
    wstack = jnp.stack([pad_w(params[k]) for k in worder]).astype(mm_dtype)  # (6,D,D)
    bstack = jnp.stack([pad_b(params[k]) for k in border])                   # (6,1,D)

    # ---- per-row inputs (switches: NO transpose, just a free reshape) ----
    ar = autoregressive_embedding.reshape(N, A).astype(jnp.float32)
    if A < D:
        ar = jnp.pad(ar, ((0, 0), (0, D - A)))
    sw = switches.reshape(N, S, E).astype(mm_dtype)
    if E < D:
        sw = jnp.pad(sw, ((0, 0), (0, 0), (0, D - E)))
    mask = switch_mask.reshape(N, S).astype(jnp.float32)
    ati = action_type_index.reshape(N, 1).astype(jnp.float32)
    u = uniform.reshape(N, 1).astype(jnp.float32)
    aux = jnp.concatenate([mask, ati, u], axis=1)                  # (N, S+2)

    # global "mask all zero -> enable everything" flag, computed once.
    flag = (jnp.sum(mask) == 0.0).astype(jnp.float32).reshape(1, 1)

    # ---- row-block size: large blocks amortize per-step overhead; force >= 2
    #      blocks when possible so both v7x TensorCores get work ----
    tn_cap = max(8, (block_rows // 8) * 8)
    n_blocks = max(1, -(-N // tn_cap))
    if n_blocks == 1 and N > 8:
        n_blocks = 2
    TN = min(tn_cap, _round_up(-(-N // n_blocks), 8))
    n_pad = _round_up(N, TN)

    pad = n_pad - N
    if pad:
        ar = jnp.pad(ar, ((0, pad), (0, 0)))
        sw = jnp.pad(sw, ((0, pad), (0, 0), (0, 0)))
        aux = jnp.pad(aux, ((0, pad), (0, 0)), constant_values=1.0)  # mask=1 keeps softmax finite

    outw = 2 * S + 1 + A
    grid = (n_pad // TN,)

    out = pl.pallas_call(
        functools.partial(_switch_head_kernel, ar_dim=A),
        grid=grid,
        in_specs=[
            pl.BlockSpec((TN, D), lambda i: (i, 0)),                  # ar
            pl.BlockSpec((TN, S, D), lambda i: (i, 0, 0)),            # switches
            pl.BlockSpec((TN, S + 2), lambda i: (i, 0)),              # mask|ati|u
            pl.BlockSpec(memory_space=pltpu.MemorySpace.SMEM),        # flag scalar
            pl.BlockSpec((6, D, D), lambda i: (0, 0, 0)),             # weight stack
            pl.BlockSpec((6, 1, D), lambda i: (0, 0, 0)),             # bias stack
        ],
        out_specs=pl.BlockSpec((TN, outw), lambda i: (i, 0)),
        out_shape=jax.ShapeDtypeStruct((n_pad, outw), jnp.float32),
        compiler_params=pltpu.CompilerParams(
            dimension_semantics=("parallel",)),
    )(ar, sw, aux, flag, wstack, bstack)

    out = out[:N]
    logits = out[:, :S].reshape(T, B, S)
    policy = out[:, S:2 * S].reshape(T, B, S)
    idx = out[:, 2 * S:2 * S + 1].astype(jnp.int32).reshape(T, B, 1)
    ar_out = out[:, 2 * S + 1:].reshape(T, B, A)
    return logits, policy, idx, ar_out


# -----------------------------------------------------------------------------
# Pure-JAX reference (same math, same uniform sample) for verification
# -----------------------------------------------------------------------------
def switch_head_reference(action_type_index, autoregressive_embedding, switches,
                          switch_mask, uniform, params):
    T, B, A = autoregressive_embedding.shape
    S, E = switches.shape[2], switches.shape[3]
    N = T * B
    ar = autoregressive_embedding.reshape(N, A).astype(jnp.float32)
    sw = switches.reshape(N, S, E).astype(jnp.float32)
    mask = switch_mask.reshape(N, S).astype(jnp.float32)
    ati = action_type_index.reshape(N, 1).astype(jnp.int32)
    u = uniform.reshape(N, 1).astype(jnp.float32)

    x = sw.reshape(N * S, E)
    h = jax.nn.relu(x @ params["kw1"] + params["kb1"])
    keys = (h @ params["kw2"] + params["kb2"]).reshape(N, S, -1)
    qh = jax.nn.relu(ar @ params["qw1"] + params["qb1"])
    query = qh @ params["qw2"] + params["qb2"]
    logits = jnp.sum(query[:, None, :] * keys, axis=-1)

    m = jnp.where(jnp.sum(mask) == 0.0, jnp.ones_like(mask), mask)
    legal = m > 0.5
    l_min = jnp.min(logits, -1, keepdims=True)
    lg = jnp.where(legal, logits, l_min)
    lg = lg - jnp.max(lg, -1, keepdims=True)
    lg = lg * m
    ex = jnp.where(legal, jnp.exp(lg), 0.0)
    policy = ex / jnp.sum(ex, -1, keepdims=True)

    cdf = jnp.cumsum(policy, -1)
    idx = jnp.minimum(jnp.sum((cdf < u).astype(jnp.int32), -1, keepdims=True), S - 1)
    emb = jnp.take_along_axis(keys, idx[:, :, None], axis=1)[:, 0, :]
    ph = jax.nn.relu(emb @ params["pw1"] + params["pb1"])
    proj = ph @ params["pw2"] + params["pb2"]
    valid = (ati == 1).astype(jnp.float32)
    ar_out = ar + valid * proj
    return (logits.reshape(T, B, S), policy.reshape(T, B, S),
            idx.reshape(T, B, 1), ar_out.reshape(T, B, A))


# -----------------------------------------------------------------------------
# Deterministic parameter init (shapes from SwitchHeadConfig)
# -----------------------------------------------------------------------------
def init_params(key, entity_dim, key_dim, ar_dim, query_hidden_dim):
    def lin(k, din, dout):
        kw, kb = jax.random.split(k)
        w = jax.random.normal(kw, (din, dout), jnp.float32) / jnp.sqrt(din)
        b = 0.01 * jax.random.normal(kb, (1, dout), jnp.float32)
        return w, b

    ks = jax.random.split(key, 6)
    kw1, kb1 = lin(ks[0], entity_dim, entity_dim)          # key_fc[0]
    kw2, kb2 = lin(ks[1], entity_dim, key_dim)             # key_fc[2]
    qw1, qb1 = lin(ks[2], ar_dim, query_hidden_dim)        # query_fc[0]
    qw2, qb2 = lin(ks[3], query_hidden_dim, key_dim)       # query_fc[2]
    pw1, pb1 = lin(ks[4], key_dim, entity_dim)             # proj_switch[0]
    pw2, pb2 = lin(ks[5], entity_dim, ar_dim)              # proj_switch[2]
    return dict(kw1=kw1, kb1=kb1, kw2=kw2, kb2=kb2,
                qw1=qw1, qb1=qb1, qw2=qw2, qb2=qb2,
                pw1=pw1, pb1=pb1, pw2=pw2, pb2=pb2)


# -----------------------------------------------------------------------------
if __name__ == "__main__":
    # Config: entity_embedding_dim=32, key_dim=32, autoregressive_embedding_dim=32,
    # query_hidden_dim=32.  T=4 timesteps, B=8 batch, S=6 switch slots (N=32 rows).
    T, B, S = 4, 8, 6
    E = K = A = QH = 32

    root = jax.random.PRNGKey(0)
    kp, ka, ks_, km, kt, ku = jax.random.split(root, 6)

    params = init_params(kp, E, K, A, QH)

    autoregressive_embedding = jax.random.normal(ka, (T, B, A), jnp.float32)
    switches = jax.random.normal(ks_, (T, B, S, E), jnp.float32)
    switch_mask = jax.random.bernoulli(km, 0.7, (T, B, S))
    switch_mask = switch_mask.at[..., 0].set(True)          # no all-illegal rows
    action_type_index = jax.random.randint(kt, (T, B), 0, 3, jnp.int32)
    # TODO(synk): torch.multinomial draws from torch's RNG; we reproduce the
    # sampling semantics via inverse-CDF with an explicit jax.random uniform.
    uniform = jax.random.uniform(ku, (T, B), jnp.float32)

    names = ("switch_logits", "switch_policy", "switch_index",
             "autoregressive_embedding")

    refs = jax.block_until_ready(
        switch_head_reference(action_type_index, autoregressive_embedding,
                              switches, switch_mask, uniform, params))

    # default large-block (forced to 2 blocks for v7x) and small-block tilings,
    # both checked against the pure-JAX reference.
    for blk in (512, 8):
        outs = switch_head_forward(action_type_index, autoregressive_embedding,
                                   switches, switch_mask, uniform, params,
                                   block_rows=blk)
        outs = jax.block_until_ready(outs)
        for name, o, r in zip(names, outs, refs):
            np.testing.assert_allclose(np.asarray(o), np.asarray(r),
                                       rtol=1e-3, atol=1e-3,
                                       err_msg=f"{name} (block_rows={blk})")

    # exercise the global "mask all zero -> enable everything" path
    zero_mask = jnp.zeros((T, B, S), jnp.bool_)
    outs = jax.block_until_ready(
        switch_head_forward(action_type_index, autoregressive_embedding,
                            switches, zero_mask, uniform, params))
    refs0 = switch_head_reference(action_type_index, autoregressive_embedding,
                                  switches, zero_mask, uniform, params)
    for name, o, r in zip(names, outs, refs0):
        np.testing.assert_allclose(np.asarray(o), np.asarray(r),
                                   rtol=1e-3, atol=1e-3,
                                   err_msg=f"{name} (zero mask)")

    # bf16 MXU-operand path (v6e/v7x): smoke test — runs, finite, right shapes.
    outs_bf16 = jax.block_until_ready(
        switch_head_forward(action_type_index, autoregressive_embedding,
                            switches, switch_mask, uniform, params,
                            use_bf16=True))
    for name, o, r in zip(names, outs_bf16, refs):
        assert o.shape == r.shape, f"{name} shape (bf16)"
        assert np.all(np.isfinite(np.asarray(o, dtype=np.float32))), f"{name} finite (bf16)"

    print("KERNEL_OK")
</pallas_src>

<mosaic_0001>
module attributes {stable_mosaic.version = 11 : i64} {
  func.func @_switch_head_kernel(%arg0: i32, %arg1: memref<16x32xf32, #tpu.memory_space<vmem>>, %arg2: memref<16x6x32xf32, #tpu.memory_space<vmem>>, %arg3: memref<16x8xf32, #tpu.memory_space<vmem>>, %arg4: memref<1x1xf32, #tpu.memory_space<smem>>, %arg5: memref<6x32x32xf32, #tpu.memory_space<vmem>>, %arg6: memref<6x1x32xf32, #tpu.memory_space<vmem>>, %arg7: memref<16x45xf32, #tpu.memory_space<vmem>>) attributes {dimension_semantics = [#tpu.dimension_semantics<parallel>], iteration_bounds = array<i64: 2>, scalar_prefetch = 0 : i64, scratch_operands = 0 : i64, tpu.core_type = #tpu.core_type<tc>, window_params = [{transform_indices = @transform_0, window_bounds = array<i64: 16, 32>}, {transform_indices = @transform_1, window_bounds = array<i64: 16, 6, 32>}, {transform_indices = @transform_2, window_bounds = array<i64: 16, 8>}, {transform_indices = @transform_3, window_bounds = array<i64: 1, 1>}, {pipeline_mode = #tpu.pipeline_mode<synchronous>, transform_indices = @transform_4, window_bounds = array<i64: 6, 32, 32>}, {pipeline_mode = #tpu.pipeline_mode<synchronous>, transform_indices = @transform_5, window_bounds = array<i64: 6, 1, 32>}, {transform_indices = @transform_6, window_bounds = array<i64: 16, 45>}]} {
    %c0 = arith.constant 0 : index
    %c0_0 = arith.constant 0 : index
    %0 = vector.load %arg1[%c0, %c0_0] : memref<16x32xf32, #tpu.memory_space<vmem>>, vector<16x32xf32>
    %c2 = arith.constant 2 : index
    %c0_1 = arith.constant 0 : index
    %c0_2 = arith.constant 0 : index
    %1 = vector.load %arg5[%c2, %c0_1, %c0_2] : memref<6x32x32xf32, #tpu.memory_space<vmem>>, vector<1x32x32xf32>
    %2 = vector.shape_cast %1 : vector<1x32x32xf32> to vector<32x32xf32>
    %cst = arith.constant dense<0.000000e+00> : vector<16x32xf32>
    %3 = tpu.matmul %0, %2, %cst {dimension_numbers = #tpu.dot_dimension_numbers<[1], [0], [0], [1], [0, 0, 1, 1], [], []>} : vector<16x32xf32>, vector<32x32xf32>, vector<16x32xf32> -> vector<16x32xf32>
    %c2_3 = arith.constant 2 : index
    %c0_4 = arith.constant 0 : index
    %c0_5 = arith.constant 0 : index
    %4 = vector.load %arg6[%c2_3, %c0_4, %c0_5] : memref<6x1x32xf32, #tpu.memory_space<vmem>>, vector<1x1x32xf32>
    %5 = vector.shape_cast %4 : vector<1x1x32xf32> to vector<1x32xf32>
    %6 = vector.broadcast %5 : vector<1x32xf32> to vector<16x32xf32>
    %7 = arith.addf %3, %6 : vector<16x32xf32>
    %cst_6 = arith.constant 0.000000e+00 : f32
    %8 = vector.broadcast %cst_6 : f32 to vector<16x32xf32>
    %9 = arith.maximumf %7, %8 : vector<16x32xf32>
    %c3 = arith.constant 3 : index
    %c0_7 = arith.constant 0 : index
    %c0_8 = arith.constant 0 : index
    %10 = vector.load %arg5[%c3, %c0_7, %c0_8] : memref<6x32x32xf32, #tpu.memory_space<vmem>>, vector<1x32x32xf32>
    %11 = vector.shape_cast %10 : vector<1x32x32xf32> to vector<32x32xf32>
    %cst_9 = arith.constant dense<0.000000e+00> : vector<16x32xf32>
    %12 = tpu.matmul %9, %11, %cst_9 {dimension_numbers = #tpu.dot_dimension_numbers<[1], [0], [0], [1], [0, 0, 1, 1], [], []>} : vector<16x32xf32>, vector<32x32xf32>, vector<16x32xf32> -> vector<16x32xf32>
    %c3_10 = arith.constant 3 : index
    %c0_11 = arith.constant 0 : index
    %c0_12 = arith.constant 0 : index
    %13 = vector.load %arg6[%c3_10, %c0_11, %c0_12] : memref<6x1x32xf32, #tpu.memory_space<vmem>>, vector<1x1x32xf32>
    %14 = vector.shape_cast %13 : vector<1x1x32xf32> to vector<1x32xf32>
    %15 = vector.broadcast %14 : vector<1x32xf32> to vector<16x32xf32>
    %16 = arith.addf %12, %15 : vector<16x32xf32>
    %c0_13 = arith.constant 0 : index
    %c0_14 = arith.constant 0 : index
    %c0_15 = arith.constant 0 : index
    %17 = vector.load %arg2[%c0_13, %c0_14, %c0_15] : memref<16x6x32xf32, #tpu.memory_space<vmem>>, vector<16x6x32xf32>
    %18 = vector.shape_cast %17 : vector<16x6x32xf32> to vector<96x32xf32>
    %c0_16 = arith.constant 0 : index
    %c0_17 = arith.constant 0 : index
    %c0_18 = arith.constant 0 : index
    %19 = vector.load %arg5[%c0_16, %c0_17, %c0_18] : memref<6x32x32xf32, #tpu.memory_space<vmem>>, vector<1x32x32xf32>
    %20 = vector.shape_cast %19 : vector<1x32x32xf32> to vector<32x32xf32>
    %cst_19 = arith.constant dense<0.000000e+00> : vector<96x32xf32>
    %21 = tpu.matmul %18, %20, %cst_19 {dimension_numbers = #tpu.dot_dimension_numbers<[1], [0], [0], [1], [0, 0, 1, 1], [], []>} : vector<96x32xf32>, vector<32x32xf32>, vector<96x32xf32> -> vector<96x32xf32>
    %c0_20 = arith.constant 0 : index
    %c0_21 = arith.constant 0 : index
    %c0_22 = arith.constant 0 : index
    %22 = vector.load %arg6[%c0_20, %c0_21, %c0_22] : memref<6x1x32xf32, #tpu.memory_space<vmem>>, vector<1x1x32xf32>
    %23 = vector.shape_cast %22 : vector<1x1x32xf32> to vector<1x32xf32>
    %24 = vector.broadcast %23 : vector<1x32xf32> to vector<96x32xf32>
    %25 = arith.addf %21, %24 : vector<96x32xf32>
    %cst_23 = arith.constant 0.000000e+00 : f32
    %26 = vector.broadcast %cst_23 : f32 to vector<96x32xf32>
    %27 = arith.maximumf %25, %26 : vector<96x32xf32>
    %c1 = arith.constant 1 : index
    %c0_24 = arith.constant 0 : index
    %c0_25 = arith.constant 0 : index
    %28 = vector.load %arg5[%c1, %c0_24, %c0_25] : memref<6x32x32xf32, #tpu.memory_space<vmem>>, vector<1x32x32xf32>
    %29 = vector.shape_cast %28 : vector<1x32x32xf32> to vector<32x32xf32>
    %cst_26 = arith.constant dense<0.000000e+00> : vector<96x32xf32>
    %30 = tpu.matmul %27, %29, %cst_26 {dimension_numbers = #tpu.dot_dimension_numbers<[1], [0], [0], [1], [0, 0, 1, 1], [], []>} : vector<96x32xf32>, vector<32x32xf32>, vector<96x32xf32> -> vector<96x32xf32>
    %c1_27 = arith.constant 1 : index
    %c0_28 = arith.constant 0 : index
    %c0_29 = arith.constant 0 : index
    %31 = vector.load %arg6[%c1_27, %c0_28, %c0_29] : memref<6x1x32xf32, #tpu.memory_space<vmem>>, vector<1x1x32xf32>
    %32 = vector.shape_cast %31 : vector<1x1x32xf32> to vector<1x32xf32>
    %33 = vector.broadcast %32 : vector<1x32xf32> to vector<96x32xf32>
    %34 = arith.addf %30, %33 : vector<96x32xf32>
    %35 = vector.shape_cast %34 : vector<96x32xf32> to vector<16x6x32xf32>
    %36 = vector.shape_cast %16 : vector<16x32xf32> to vector<16x1x32xf32>
    %37 = vector.broadcast %36 : vector<16x1x32xf32> to vector<16x6x32xf32>
    %38 = arith.mulf %37, %35 : vector<16x6x32xf32>
    %cst_30 = arith.constant dense<0.000000e+00> : vector<16x6xf32>
    %39 = vector.multi_reduction <add>, %38, %cst_30 [2] : vector<16x6x32xf32> to vector<16x6xf32>
    %c0_31 = arith.constant 0 : index
    %c0_32 = arith.constant 0 : index
    %40 = vector.load %arg3[%c0_31, %c0_32] : memref<16x8xf32, #tpu.memory_space<vmem>>, vector<16x8xf32>
    %41 = vector.extract_strided_slice %40 {offsets = [0, 0], sizes = [16, 6], strides = [1, 1]} : vector<16x8xf32> to vector<16x6xf32>
    %c0_33 = arith.constant 0 : index
    %c0_34 = arith.constant 0 : index
    %42 = memref.load %arg4[%c0_33, %c0_34] : memref<1x1xf32, #tpu.memory_space<smem>>
    %43 = vector.broadcast %42 : f32 to vector<16x6xf32>
    %44 = arith.maximumf %41, %43 : vector<16x6xf32>
    %cst_35 = arith.constant 5.000000e-01 : f32
    %45 = vector.broadcast %cst_35 : f32 to vector<16x6xf32>
    %46 = arith.cmpf ogt, %44, %45 : vector<16x6xf32>
    %cst_36 = arith.constant dense<0x7F800000> : vector<16xf32>
    %47 = vector.multi_reduction <minimumf>, %39, %cst_36 [1] : vector<16x6xf32> to vector<16xf32>
    %48 = vector.shape_cast %47 : vector<16xf32> to vector<16x1xf32>
    %49 = vector.shape_cast %48 : vector<16x1xf32> to vector<16x1xf32>
    %50 = vector.broadcast %49 : vector<16x1xf32> to vector<16x6xf32>
    %51 = arith.select %46, %39, %50 : vector<16x6xi1>, vector<16x6xf32>
    %cst_37 = arith.constant dense<0xFF800000> : vector<16xf32>
    %52 = vector.multi_reduction <maximumf>, %51, %cst_37 [1] : vector<16x6xf32> to vector<16xf32>
    %53 = vector.shape_cast %52 : vector<16xf32> to vector<16x1xf32>
    %54 = vector.broadcast %53 : vector<16x1xf32> to vector<16x6xf32>
    %55 = arith.subf %51, %54 : vector<16x6xf32>
    %56 = arith.mulf %55, %44 : vector<16x6xf32>
    %57 = math.exp %56 : vector<16x6xf32>
    %cst_38 = arith.constant 0.000000e+00 : f32
    %58 = vector.broadcast %cst_38 : f32 to vector<16x6xf32>
    %59 = arith.select %46, %57, %58 : vector<16x6xi1>, vector<16x6xf32>
    %cst_39 = arith.constant dense<0.000000e+00> : vector<16xf32>
    %60 = vector.multi_reduction <add>, %59, %cst_39 [1] : vector<16x6xf32> to vector<16xf32>
    %61 = vector.shape_cast %60 : vector<16xf32> to vector<16x1xf32>
    %62 = tpu.reciprocal %61 : vector<16x1xf32> -> vector<16x1xf32>
    %63 = vector.broadcast %62 : vector<16x1xf32> to vector<16x6xf32>
    %64 = arith.mulf %59, %63 : vector<16x6xf32>
    %65 = tpu.iota {dimensions = array<i32: 0>} : vector<6x6xi32>
    %66 = tpu.iota {dimensions = array<i32: 1>} : vector<6x6xi32>
    %67 = arith.cmpi sle, %65, %66 : vector<6x6xi32>
    %68 = arith.extui %67 : vector<6x6xi1> to vector<6x6xi32>
    %69 = arith.sitofp %68 : vector<6x6xi32> to vector<6x6xf32>
    %cst_40 = arith.constant dense<0.000000e+00> : vector<16x6xf32>
    %70 = tpu.matmul %64, %69, %cst_40 {dimension_numbers = #tpu.dot_dimension_numbers<[1], [0], [0], [1], [0, 0, 1, 1], [], []>} : vector<16x6xf32>, vector<6x6xf32>, vector<16x6xf32> -> vector<16x6xf32>
    %71 = vector.extract_strided_slice %40 {offsets = [0, 7], sizes = [16, 1], strides = [1, 1]} : vector<16x8xf32> to vector<16x1xf32>
    %72 = vector.broadcast %71 : vector<16x1xf32> to vector<16x6xf32>
    %73 = arith.cmpf olt, %70, %72 : vector<16x6xf32>
    %74 = arith.extui %73 : vector<16x6xi1> to vector<16x6xi32>
    %75 = arith.sitofp %74 : vector<16x6xi32> to vector<16x6xf32>
    %cst_41 = arith.constant dense<0.000000e+00> : vector<16xf32>
    %76 = vector.multi_reduction <add>, %75, %cst_41 [1] : vector<16x6xf32> to vector<16xf32>
    %77 = vector.shape_cast %76 : vector<16xf32> to vector<16x1xf32>
    %cst_42 = arith.constant 5.000000e+00 : f32
    %78 = vector.broadcast %cst_42 : f32 to vector<16x1xf32>
    %79 = arith.minimumf %77, %78 : vector<16x1xf32>
    %80 = arith.fptosi %79 : vector<16x1xf32> to vector<16x1xi32>
    %81 = tpu.iota {dimensions = array<i32: 1>} : vector<16x6xi32>
    %82 = vector.broadcast %80 : vector<16x1xi32> to vector<16x6xi32>
    %83 = arith.cmpi eq, %81, %82 : vector<16x6xi32>
    %84 = arith.extui %83 : vector<16x6xi1> to vector<16x6xi32>
    %85 = arith.sitofp %84 : vector<16x6xi32> to vector<16x6xf32>
    %86 = vector.shape_cast %85 : vector<16x6xf32> to vector<16x6x1xf32>
    %87 = vector.broadcast %86 : vector<16x6x1xf32> to vector<16x6x32xf32>
    %88 = arith.mulf %87, %35 : vector<16x6x32xf32>
    %cst_43 = arith.constant dense<0.000000e+00> : vector<16x32xf32>
    %89 = vector.multi_reduction <add>, %88, %cst_43 [1] : vector<16x6x32xf32> to vector<16x32xf32>
    %c4 = arith.constant 4 : index
    %c0_44 = arith.constant 0 : index
    %c0_45 = arith.constant 0 : index
    %90 = vector.load %arg5[%c4, %c0_44, %c0_45] : memref<6x32x32xf32, #tpu.memory_space<vmem>>, vector<1x32x32xf32>
    %91 = vector.shape_cast %90 : vector<1x32x32xf32> to vector<32x32xf32>
    %cst_46 = arith.constant dense<0.000000e+00> : vector<16x32xf32>
    %92 = tpu.matmul %89, %91, %cst_46 {dimension_numbers = #tpu.dot_dimension_numbers<[1], [0], [0], [1], [0, 0, 1, 1], [], []>} : vector<16x32xf32>, vector<32x32xf32>, vector<16x32xf32> -> vector<16x32xf32>
    %c4_47 = arith.constant 4 : index
    %c0_48 = arith.constant 0 : index
    %c0_49 = arith.constant 0 : index
    %93 = vector.load %arg6[%c4_47, %c0_48, %c0_49] : memref<6x1x32xf32, #tpu.memory_space<vmem>>, vector<1x1x32xf32>
    %94 = vector.shape_cast %93 : vector<1x1x32xf32> to vector<1x32xf32>
    %95 = vector.broadcast %94 : vector<1x32xf32> to vector<16x32xf32>
    %96 = arith.addf %92, %95 : vector<16x32xf32>
    %cst_50 = arith.constant 0.000000e+00 : f32
    %97 = vector.broadcast %cst_50 : f32 to vector<16x32xf32>
    %98 = arith.maximumf %96, %97 : vector<16x32xf32>
    %c5 = arith.constant 5 : index
    %c0_51 = arith.constant 0 : index
    %c0_52 = arith.constant 0 : index
    %99 = vector.load %arg5[%c5, %c0_51, %c0_52] : memref<6x32x32xf32, #tpu.memory_space<vmem>>, vector<1x32x32xf32>
    %100 = vector.shape_cast %99 : vector<1x32x32xf32> to vector<32x32xf32>
    %cst_53 = arith.constant dense<0.000000e+00> : vector<16x32xf32>
    %101 = tpu.matmul %98, %100, %cst_53 {dimension_numbers = #tpu.dot_dimension_numbers<[1], [0], [0], [1], [0, 0, 1, 1], [], []>} : vector<16x32xf32>, vector<32x32xf32>, vector<16x32xf32> -> vector<16x32xf32>
    %c5_54 = arith.constant 5 : index
    %c0_55 = arith.constant 0 : index
    %c0_56 = arith.constant 0 : index
    %102 = vector.load %arg6[%c5_54, %c0_55, %c0_56] : memref<6x1x32xf32, #tpu.memory_space<vmem>>, vector<1x1x32xf32>
    %103 = vector.shape_cast %102 : vector<1x1x32xf32> to vector<1x32xf32>
    %104 = vector.broadcast %103 : vector<1x32xf32> to vector<16x32xf32>
    %105 = arith.addf %101, %104 : vector<16x32xf32>
    %106 = vector.extract_strided_slice %40 {offsets = [0, 6], sizes = [16, 1], strides = [1, 1]} : vector<16x8xf32> to vector<16x1xf32>
    %cst_57 = arith.constant 1.000000e+00 : f32
    %107 = vector.broadcast %cst_57 : f32 to vector<16x1xf32>
    %108 = arith.cmpf oeq, %106, %107 : vector<16x1xf32>
    %109 = arith.extui %108 : vector<16x1xi1> to vector<16x1xi32>
    %110 = arith.sitofp %109 : vector<16x1xi32> to vector<16x1xf32>
    %111 = vector.broadcast %110 : vector<16x1xf32> to vector<16x32xf32>
    %112 = arith.mulf %111, %105 : vector<16x32xf32>
    %113 = arith.addf %0, %112 : vector<16x32xf32>
    %c0_58 = arith.constant 0 : index
    %c0_59 = arith.constant 0 : index
    %114 = vector.load %arg7[%c0_58, %c0_59] : memref<16x45xf32, #tpu.memory_space<vmem>>, vector<16x6xf32>
    tpu.vector_store %arg7[%c0_58, %c0_59], %39 {strides = array<i32>} : memref<16x45xf32, #tpu.memory_space<vmem>>, vector<16x6xf32>,
    %c0_60 = arith.constant 0 : index
    %c6 = arith.constant 6 : index
    %115 = vector.load %arg7[%c0_60, %c6] : memref<16x45xf32, #tpu.memory_space<vmem>>, vector<16x6xf32>
    tpu.vector_store %arg7[%c0_60, %c6], %64 {strides = array<i32>} : memref<16x45xf32, #tpu.memory_space<vmem>>, vector<16x6xf32>,
    %116 = arith.sitofp %80 : vector<16x1xi32> to vector<16x1xf32>
    %c0_61 = arith.constant 0 : index
    %c12 = arith.constant 12 : index
    %117 = vector.load %arg7[%c0_61, %c12] : memref<16x45xf32, #tpu.memory_space<vmem>>, vector<16x1xf32>
    tpu.vector_store %arg7[%c0_61, %c12], %116 {strides = array<i32>} : memref<16x45xf32, #tpu.memory_space<vmem>>, vector<16x1xf32>,
    %c0_62 = arith.constant 0 : index
    %c13 = arith.constant 13 : index
    %118 = vector.load %arg7[%c0_62, %c13] : memref<16x45xf32, #tpu.memory_space<vmem>>, vector<16x32xf32>
    tpu.vector_store %arg7[%c0_62, %c13], %113 {strides = array<i32>} : memref<16x45xf32, #tpu.memory_space<vmem>>, vector<16x32xf32>,
    return
  }
  func.func @transform_0(%arg0: i32) -> (i32, i32) {
    %c0_i32 = arith.constant 0 : i32
    %c0_i32_0 = arith.constant 0 : i32
    return %arg0, %c0_i32 : i32, i32
  }
  func.func @transform_1(%arg0: i32) -> (i32, i32, i32) {
    %c0_i32 = arith.constant 0 : i32
    %c0_i32_0 = arith.constant 0 : i32
    %c0_i32_1 = arith.constant 0 : i32
    return %arg0, %c0_i32, %c0_i32_0 : i32, i32, i32
  }
  func.func @transform_2(%arg0: i32) -> (i32, i32) {
    %c0_i32 = arith.constant 0 : i32
    %c0_i32_0 = arith.constant 0 : i32
    return %arg0, %c0_i32 : i32, i32
  }
  func.func @transform_3(%arg0: i32) -> (i32, i32) {
    %c0_i32 = arith.constant 0 : i32
    %c0_i32_0 = arith.constant 0 : i32
    %c0_i32_1 = arith.constant 0 : i32
    return %c0_i32, %c0_i32_0 : i32, i32
  }
  func.func @transform_4(%arg0: i32) -> (i32, i32, i32) {
    %c0_i32 = arith.constant 0 : i32
    %c0_i32_0 = arith.constant 0 : i32
    %c0_i32_1 = arith.constant 0 : i32
    %c0_i32_2 = arith.constant 0 : i32
    return %c0_i32, %c0_i32_0, %c0_i32_1 : i32, i32, i32
  }
  func.func @transform_5(%arg0: i32) -> (i32, i32, i32) {
    %c0_i32 = arith.constant 0 : i32
    %c0_i32_0 = arith.constant 0 : i32
    %c0_i32_1 = arith.constant 0 : i32
    %c0_i32_2 = arith.constant 0 : i32
    return %c0_i32, %c0_i32_0, %c0_i32_1 : i32, i32, i32
  }
  func.func @transform_6(%arg0: i32) -> (i32, i32) {
    %c0_i32 = arith.constant 0 : i32
    %c0_i32_0 = arith.constant 0 : i32
    return %arg0, %c0_i32 : i32, i32
  }
}

</mosaic_0001>

<bundles_post_ra>
// kernel: tpu_custom_call.1
= control target key start
LH: loop header
LB: loop body
LE: loop exit
PB: predicated region body
PF: predicated region fallthrough
CT: control target
= control target key end

     0   :  { %s4224_s0 = inlined_call_operand.vmem [shape: f32[32,32], index: 0, kind: input, shape index: {}]   ;;  %s4225_s1 = inlined_call_operand.vmem [shape: f32[32,6,32], index: 1, kind: input, shape index: {}]   ;;  %s4226_s2 = inlined_call_operand.vmem [shape: f32[32,8], index: 2, kind: input, shape index: {}]   ;;  %s4227_s3 = inlined_call_operand.<no memory space> [shape: f32[1,1], index: 3, kind: input, shape index: {}]   ;;  %s4228_s4 = inlined_call_operand.vmem [shape: f32[6,32,32], index: 4, kind: input, shape index: {}]   ;;  %s4229_s5 = inlined_call_operand.vmem [shape: f32[6,1,32], index: 5, kind: input, shape index: {}]   ;;  %s4230_s6 = inlined_call_operand.hbm [shape: f32[32,45], index: 6, kind: output, shape index: {}]  }
   0x1   :  { %11 = sst [smem:[#allocation2]] %s4227_s3 }
   0x2   :  { %12 = vsyncpa [#allocation4], 0 }
   0x3   :  { %14 = vsyncpa [#allocation4 + $0x1], 0  ;;  %s3434_s23 = smov 0   ;;  %s3436_s24 = smov 0  }
   0x4   :  { %s3438_s25 = smov 0   ;;  %s3440_s26 = smov 0  }
   0x5 LB: > { %s3455_s3 = sadd.s32 4294967295, %s3384_s26   ;;  %s2937_s27 = sadd.s32 4294967294, %s3384_s26   ;;  %s3384_s26 = sphi %s3440_s26, %s4236_s26   ;;  %s3380_s25 = sphi %s3438_s25, %s4235_s25   ;;  %s3376_s24 = sphi %s3436_s24, %s4234_s24   ;;  %s3372_s23 = sphi %s3434_s23, %s4233_s23  }
   0x6   : > { %s3459_s28 = sadd.s32 1, %s3384_s26   ;;  %s168_s29 = sadd.s32 1, %s3380_s25 }
   0x7   : > { %s165_s30 = ssub.s32 %s3384_s26, %s3459_s28  ;;  %p178_p0 = scmp.ne.s32.totalorder %s3380_s25, %s3376_s24 }
   0x8   : > { %p166_p1 = scmp.eq.s32.totalorder %s165_s30, 0  ;;  %p179_p2 = scmp.eq.s32.totalorder %s3455_s3, 1 }
   0x9   : > { %p184_p3 = scmp.ne.s32.totalorder %s3376_s24, %s3372_s23  ;;  %p185_p4 = scmp.eq.s32.totalorder %s2937_s27, 1 }
   0xa   : > { %s3470_s7 = scalar_select %p166_p1, %s3380_s25, %s168_s29  }
   0xb   : > { %p3472_p5 = por %p179_p2, %p178_p0  ;;  %p3476_p6 = por %p185_p4, %p184_p3 }
   0xc   : > { %p2940_p7 = scmp.ge.s32.totalorder %s3384_s26, 1  ;;  %p239_p8 = scmp.lt.s32.totalorder %s3384_s26, 3 }
   0xe   : > { %p240_p9 = pnand %p2940_p7, %p239_p8 }
   0xf   : > { %v2948_v0 = vld [vmem:[%s4228_s4 + $0x40] sm:$0xff] (!%p240_p9)  ;;  %v2949_v1 = vld [vmem:[%s4228_s4 + $0x48] sm:$0xff] (!%p240_p9)  ;;  %v2950_v2 = vld [vmem:[%s4228_s4 + $0x50] sm:$0xff] (!%p240_p9)  ;;  %s2942_s16 = sshll.u32 (!%p240_p9), %s3455_s3, 1  ;;  %s2944_s17 = sshll.u32 (!%p240_p9), %s3455_s3, 4  ;;  %v527_v3 = vlaneseq (!%p240_p9)  ;;  %vm313_vm0 = vcmask (!%p240_p9), 261120  }
  0x10   : > { %243 = sbr.rel (%p240_p9) target bundleno = 2238 (0x8be), region = 44  ;;  %v3187_v4 = vpack.c.bf16 (!%p240_p9), %v2949_v1, %v2948_v0  ;;  %v2951_v5 = vld [vmem:[%s4228_s4 + $0x58] sm:$0xff] (!%p240_p9)  ;;  %p280_p10 = scmp.lt.s32.totalorder (!%p240_p9), %s2942_s16, 3  ;;  %v779_v7 = vld [vmem:[%s4228_s4] sm:$0xff] (!%p240_p9)  ;;  %v780_v8 = vld [vmem:[%s4228_s4 + $0x8] sm:$0xff] (!%p240_p9)  ;;  %vm2013_vm1 = vcmask (!%p240_p9), 259072  }
  0x11   : > { %p286_p11 = scmp.lt.s32.totalorder (!%p240_p9), %s2944_s17, 31  ;;  %v3191_v6 = vpack.c.bf16 (!%p240_p9), %v2951_v5, %v2950_v2  ;;  %v2956_v9 = vld [vmem:[%s4228_s4 + $0x60] sm:$0xff] (!%p240_p9)  ;;  %v3386_v10 = vmov (!%p240_p9), 1983009808   ;;  %v3508_v12 = vshrl.u32 (!%p240_p9), %v527_v3, 7  ;;  %v2957_v13 = vld [vmem:[%s4228_s4 + $0x68] sm:$0xff] (!%p240_p9)  ;;  %v3203_v15 = vpack.c.bf16 (!%p240_p9), %v780_v8, %v779_v7 }
  0x12   : > { %3188 = vmatprep.subr.bf16.mxu0 (!%p240_p9), %v3187_v4  ;;  %v525_v11 = vunpack.c.l.s4 (!%p240_p9), %v3386_v10  ;;  %v3195_v14 = vpack.c.bf16 (!%p240_p9), %v2957_v13, %v2956_v9  ;;  %v781_v17 = vld [vmem:[%s4228_s4 + $0x10] sm:$0xff] (!%p240_p9)  ;;  %v782_v18 = vld [vmem:[%s4228_s4 + $0x18] sm:$0xff] (!%p240_p9)  ;;  %vm2152_vm2 = vcmask (!%p240_p9), 1041409   ;;  %vm2154_vm3 = vcmask (!%p240_p9), 1042434   ;;  %s276_s20 = sand.u32 (!%p240_p9), 1, %s3376_s24   ;;  %s2064_s27 = sld [smem:[#allocation2]] (!%p240_p9) }
  0x13   : > { %3190 = vmatpush3.bf16.msra.mxu0 (!%p240_p9), %v3187_v4  ;;  %v3207_v22 = vpack.c.bf16 (!%p240_p9), %v782_v18, %v781_v17  ;;  %vm2156_vm4 = vcmask (!%p240_p9), 1043459   ;;  %vm2158_vm5 = vcmask (!%p240_p9), 1044484   ;;  %vm2160_vm6 = vcmask (!%p240_p9), 1045509   ;;  %s2941_s21 = sshll.u32 (!%p240_p9), %s276_s20, 4 }
  0x14   : > { %3192 = vmatprep.subr.bf16.mxu0 (!%p240_p9), %v3191_v6  ;;  %v526_v16 = vunpack.c.0.s8 (!%p240_p9), %v525_v11  ;;  %3196 = vmatprep.subr.bf16.mxu1 (!%p240_p9), %v3195_v14  ;;  %vm2162_vm7 = vcmask (!%p240_p9), 1046534   ;;  %vm2164_vm8 = vcmask (!%p240_p9), 1047559   ;;  %vm2175_vm9 = vcmask (!%p240_p9), 48128  }
  0x15   : > { %3198 = vmatpush3.bf16.msra.mxu1 (!%p240_p9), %v3195_v14  ;;  %vm2221_vm13 = vcmask (!%p240_p9), 1045504  }
  0x16   : > { %v3529_v20 = vsub.s32 (!%p240_p9), %v526_v16, %v3508_v12 }
  0x17   : > { %s4238_s16 = smov (!%p280_p10, %s2942_s16), 3  ;;  %s4240_s17 = smov (!%p286_p11, %s2944_s17), 31  ;;  %3194 = vmatpush3.bf16.msra.mxu0 %v3191_v6 }
  0x18   : > { %s2943_s12 = sshll.u32 %s4238_s16, 3  ;;  %s2945_s22 = sshll.u32 %s4240_s17, 3  ;;  %3204 = vmatprep.subr.bf16.mxu0 %v3203_v15 }
  0x19   : > { %s3519_s15 = scalar_lea.vmem %s4224_s0, %s2943_s12  ;;  %s3536_s30 = scalar_lea.vmem %s4225_s1, %s2945_s22 }
  0x1a   : > { %v298_v19 = vld [vmem:[%s3519_s15] sm:$0xff]  ;;  %v299_v21 = vld [vmem:[%s3519_s15 + $0x8] sm:$0xff]  ;;  %v493_v25 = vld [vmem:[%s3536_s30 + $0x10] sm:$0x3f]  ;;  %s3997_s22 = scalar_lea.vmem [#allocation3], %s2941_s21  ;;  %s295_s17 = scalar_lea.vmem %s4226_s2, %s2943_s12 }
  0x1b   : > { %3094 = vmatprep.mubr.msk.f32.mxu0 %vm313_vm0, %v298_v19  ;;  %v491_v23 = vld [vmem:[%s3536_s30] sm:$0x3f]  ;;  %v492_v24 = vld [vmem:[%s3536_s30 + $0x8] sm:$0x3f]  ;;  %v494_v30 = vld [vmem:[%s3536_s30 + $0x18] sm:$0x3f]  ;;  %v562_v31 = vrot.slane %v493_v25, %v3529_v20  ;;  %v555_v32 = vcombine.high %v493_v25, %v493_v25 }
  0x1c   : > { %v523_v26 = vcombine.high %v491_v23, %v491_v23  ;;  %v530_v27 = vrot.slane %v491_v23, %v3529_v20  ;;  %v539_v28 = vcombine.high %v492_v24, %v492_v24  ;;  %v546_v29 = vrot.slane %v492_v24, %v3529_v20  ;;  %3095 = vmatmul.mubr.msk.f32.vlgmr.msra.gmra.mrb[0].mxu0 %vm313_vm0, %v299_v21  ;;  %v495_v35 = vld [vmem:[%s3536_s30 + $0x20] sm:$0x3f]  ;;  %v496_v51 = vld [vmem:[%s3536_s30 + $0x28] sm:$0x3f]  ;;  %v497_v53 = vld [vmem:[%s3536_s30 + $0x30] sm:$0x3f] }
  0x1d   : > { %v571_v33 = vcombine.high %v494_v30, %v494_v30  ;;  %v578_v34 = vrot.slane %v494_v30, %v3529_v20  ;;  %3206 = vmatpush3.bf16.msra.mxu0 %v3203_v15  ;;  %v570_v40 = vcombine.high %v562_v31, %v562_v31  ;;  %v569_v41 = vrot.slane %v555_v32, %v3529_v20  ;;  %v498_v2 = vld [vmem:[%s3536_s30 + $0x38] sm:$0x3f]  ;;  %v499_v8 = vld [vmem:[%s3536_s30 + $0x40] sm:$0x3f]  ;;  %s3391_s16 = smov 6   ;;  %s3392_s21 = smov 13  }
  0x1e   : > { %v537_v36 = vrot.slane %v523_v26, %v3529_v20  ;;  %v538_v37 = vcombine.high %v530_v27, %v530_v27  ;;  %v553_v38 = vrot.slane %v539_v28, %v3529_v20  ;;  %v554_v39 = vcombine.high %v546_v29, %v546_v29  ;;  %3208 = vmatprep.subr.bf16.mxu0 %v3207_v22  ;;  %v501_v28 = vld [vmem:[%s3536_s30 + $0x50] sm:$0x3f]  ;;  %s2851_s29 = sshll.u32 %s3997_s22, 4  ;;  %s3393_s12 = smov [#allocation3]   ;;  %s4177_s29 = int_to_ptr.vmem [resolvable:$true] %s2851_s29 }
  0x1f   : > { %v585_v42 = vrot.slane %v571_v33, %v3529_v20  ;;  %v586_v43 = vcombine.high %v578_v34, %v578_v34  ;;  %v587_v47 = vcombine.high %v495_v35, %v495_v35  ;;  %v808_v48 = vcombine.low %v562_v31, %v570_v40  ;;  %s3326_s10 = sshll.u32 %s3393_s12, 4  ;;  %s3327_s10 = int_to_ptr.vmem [resolvable:$false] %s3326_s10 }
  0x20   : > { %v790_v44 = vcombine.low %v530_v27, %v538_v37  ;;  %v791_v45 = vcombine.low %v537_v36, %v546_v29  ;;  %v807_v46 = vcombine.low %v554_v39, %v553_v38  ;;  %v824_v49 = vcombine.low %v569_v41, %v578_v34  ;;  %v502_v37 = vld [vmem:[%s3536_s30 + $0x58] sm:$0x3f]  ;;  %s3328_s11 = scalar_lea.vmem %s3327_s10, 512  ;;  %p3329_p1 = scmp.lt.s32.totalorder %s4177_s29, %s3327_s10 }
  0x21   : > { %v825_v50 = vcombine.low %v586_v43, %v585_v42  ;;  %v594_v52 = vrot.slane %v495_v35, %v3529_v20  ;;  %3210 = vmatpush3.bf16.msra.mxu0 %v3207_v22  ;;  %v601_v57 = vrot.slane %v587_v47, %v3529_v20  ;;  %v822_v58 = vrot.slane %v808_v48, %v3529_v20  ;;  %v500_v22 = vld [vmem:[%s3536_s30 + $0x48] sm:$0x3f] }
  0x22   : > { %v798_v54 = vrot.slane %v790_v44, %v3529_v20  ;;  %v805_v55 = vrot.slane %v791_v45, %v3529_v20  ;;  %v815_v56 = vrot.slane %v807_v46, %v3529_v20  ;;  %v832_v59 = vrot.slane %v824_v49, %v3529_v20  ;;  %v503_v46 = vld [vmem:[%s3536_s30 + $0x60] sm:$0x3f] }
  0x23   : > { %v839_v60 = vrot.slane %v825_v50, %v3529_v20  ;;  %v602_v61 = vcombine.high %v594_v52, %v594_v52  ;;  %v610_v63 = vrot.slane %v496_v51, %v3529_v20  ;;  %v603_v0 = vcombine.high %v496_v51, %v496_v51 }
  0x24   : > { %v806_v62 = vcombine.low %v798_v54, %v805_v55  ;;  %v626_v1 = vrot.slane %v497_v53, %v3529_v20  ;;  %v823_v4 = vcombine.low %v815_v56, %v822_v58  ;;  %v619_v7 = vcombine.high %v497_v53, %v497_v53  ;;  %v504_v55 = vld [vmem:[%s3536_s30 + $0x68] sm:$0x3f] }
  0x25   : > { %v840_v5 = vcombine.low %v832_v59, %v839_v60  ;;  %v841_v6 = vcombine.low %v594_v52, %v602_v61  ;;  %v842_v9 = vcombine.low %v601_v57, %v610_v63  ;;  %v617_v10 = vrot.slane %v603_v0, %v3529_v20  ;;  %v505_v0 = vld [vmem:[%s3536_s30 + $0x70] sm:$0x3f] }
  0x26   : > { %3116 = vmatprep.mubr.msk.f32.mxu0 %vm313_vm0, %v806_v62  ;;  %v618_v11 = vcombine.high %v610_v63, %v610_v63  ;;  %v634_v13 = vcombine.high %v626_v1, %v626_v1  ;;  %v633_v15 = vrot.slane %v619_v7, %v3529_v20  ;;  %v635_v16 = vcombine.high %v498_v2, %v498_v2 }
  0x27   : > { %3117 = vmatmul.mubr.msk.f32.vlgmr.msra.gmra.mrb[2].mxu0 %vm313_vm0, %v823_v4  ;;  %v849_v14 = vrot.slane %v841_v6, %v3529_v20  ;;  %v642_v17 = vrot.slane %v498_v2, %v3529_v20  ;;  %v856_v18 = vrot.slane %v842_v9, %v3529_v20  ;;  %v651_v23 = vcombine.high %v499_v8, %v499_v8 }
  0x28   : > { %3119 = vmatprep.mubr.msk.f32.mxu0 %vm313_vm0, %v840_v5  ;;  %v858_v19 = vcombine.low %v618_v11, %v617_v10  ;;  %v859_v21 = vcombine.low %v626_v1, %v634_v13  ;;  %v649_v24 = vrot.slane %v635_v16, %v3529_v20  ;;  %v658_v27 = vrot.slane %v499_v8, %v3529_v20  ;;  %v506_v10 = vld [vmem:[%s3536_s30 + $0x78] sm:$0x3f] }
  0x29   : > { %v650_v25 = vcombine.high %v642_v17, %v642_v17  ;;  %v875_v26 = vcombine.low %v633_v15, %v642_v17  ;;  %v857_v29 = vcombine.low %v849_v14, %v856_v18  ;;  %v665_v32 = vrot.slane %v651_v23, %v3529_v20 }
  0x2a   : > { %v866_v30 = vrot.slane %v858_v19, %v3529_v20  ;;  %v873_v31 = vrot.slane %v859_v21, %v3529_v20  ;;  %v666_v35 = vcombine.high %v658_v27, %v658_v27  ;;  %v674_v36 = vrot.slane %v500_v22, %v3529_v20 }
  0x2b   : > { %v876_v33 = vcombine.low %v650_v25, %v649_v24  ;;  %v883_v34 = vrot.slane %v875_v26, %v3529_v20  ;;  %3120 = vmatmul.mubr.msk.f32.gmra.mrb[4].mxu0 %vm313_vm0, %v857_v29  ;;  %v667_v39 = vcombine.high %v500_v22, %v500_v22  ;;  %v690_v40 = vrot.slane %v501_v28, %v3529_v20 }
  0x2c   : > { %v874_v38 = vcombine.low %v866_v30, %v873_v31  ;;  %v683_v41 = vcombine.high %v501_v28, %v501_v28  ;;  %v892_v43 = vcombine.low %v658_v27, %v666_v35  ;;  %v893_v44 = vcombine.low %v665_v32, %v674_v36 }
  0x2d   : > { %v890_v42 = vrot.slane %v876_v33, %v3529_v20  ;;  %v682_v45 = vcombine.high %v674_v36, %v674_v36  ;;  %v681_v47 = vrot.slane %v667_v39, %v3529_v20  ;;  %v698_v48 = vcombine.high %v690_v40, %v690_v40 }
  0x2e   : > { %3122 = vmatprep.mubr.msk.f32.mxu0 %vm313_vm0, %v874_v38  ;;  %v697_v49 = vrot.slane %v683_v41, %v3529_v20  ;;  %v699_v50 = vcombine.high %v502_v37, %v502_v37  ;;  %v900_v52 = vrot.slane %v892_v43, %v3529_v20  ;;  %v907_v53 = vrot.slane %v893_v44, %v3529_v20  ;;  %v2958_v41 = vld [vmem:[%s4228_s4 + $0x70] sm:$0xff]  ;;  %v2977_v44 = vld [vmem:[%s4228_s4 + $0x20] sm:$0xff] }
  0x2f   : > { %v891_v51 = vcombine.low %v883_v34, %v890_v42  ;;  %v706_v54 = vrot.slane %v502_v37, %v3529_v20  ;;  %v909_v56 = vcombine.low %v682_v45, %v681_v47  ;;  %v910_v57 = vcombine.low %v690_v40, %v698_v48  ;;  %v2959_v42 = vld [vmem:[%s4228_s4 + $0x78] sm:$0xff]  ;;  %v2978_v45 = vld [vmem:[%s4228_s4 + $0x28] sm:$0xff]  ;;  %v2953_v47 = vld [vmem:[%s4229_s5 + $0x2] ss:$0 sm:$0xff] }
  0x30   : > { %v713_v58 = vrot.slane %v699_v50, %v3529_v20  ;;  %v715_v59 = vcombine.high %v503_v46, %v503_v46  ;;  %v908_v60 = vcombine.low %v900_v52, %v907_v53  ;;  %v722_v63 = vrot.slane %v503_v46, %v3529_v20  ;;  %v2979_v52 = vld [vmem:[%s4228_s4 + $0x30] sm:$0xff]  ;;  %v2980_v53 = vld [vmem:[%s4228_s4 + $0x38] sm:$0xff] }
  0x31   : > { %3123 = vmatmul.mubr.msk.f32.gmra.mrb[6].mxu0 %vm313_vm0, %v891_v51  ;;  %v714_v61 = vcombine.high %v706_v54, %v706_v54  ;;  %v926_v62 = vcombine.low %v697_v49, %v706_v54  ;;  %v917_v1 = vrot.slane %v909_v56, %v3529_v20  ;;  %v924_v2 = vrot.slane %v910_v57, %v3529_v20  ;;  %v2964_v57 = vld [vmem:[%s4229_s5] ss:$0 sm:$0xff] }
  0x32   : > { %v729_v4 = vrot.slane %v715_v59, %v3529_v20  ;;  %v738_v5 = vrot.slane %v504_v55, %v3529_v20  ;;  %3125 = vmatprep.mubr.msk.f32.mxu0 %vm313_vm0, %v908_v60  ;;  %v730_v8 = vcombine.high %v722_v63, %v722_v63  ;;  %v731_v9 = vcombine.high %v504_v55, %v504_v55 }
  0x33   : > { %v927_v6 = vcombine.low %v714_v61, %v713_v58  ;;  %v934_v7 = vrot.slane %v926_v62, %v3529_v20  ;;  %v925_v11 = vcombine.low %v917_v1, %v924_v2  ;;  %v754_v15 = vrot.slane %v505_v0, %v3529_v20 }
  0x34   : > { %v944_v13 = vcombine.low %v729_v4, %v738_v5  ;;  %v746_v14 = vcombine.high %v738_v5, %v738_v5  ;;  %v943_v17 = vcombine.low %v722_v63, %v730_v8  ;;  %v745_v18 = vrot.slane %v731_v9, %v3529_v20 }
  0x35   : > { %v941_v16 = vrot.slane %v927_v6, %v3529_v20  ;;  %v747_v19 = vcombine.high %v505_v0, %v505_v0  ;;  %3126 = vmatmul.mubr.msk.f32.gmra.mrb[8].mxu0 %vm313_vm0, %v925_v11  ;;  %v762_v22 = vcombine.high %v754_v15, %v754_v15  ;;  %v763_v23 = vcombine.high %v506_v10, %v506_v10 }
  0x36   : > { %v958_v21 = vrot.slane %v944_v13, %v3529_v20  ;;  %v770_v24 = vrot.slane %v506_v10, %v3529_v20  ;;  %v951_v26 = vrot.slane %v943_v17, %v3529_v20  ;;  %v960_v27 = vcombine.low %v746_v14, %v745_v18 }
  0x37   : > { %v942_v25 = vcombine.low %v934_v7, %v941_v16  ;;  %v761_v28 = vrot.slane %v747_v19, %v3529_v20  ;;  %v961_v29 = vcombine.low %v754_v15, %v762_v22  ;;  %v777_v30 = vrot.slane %v763_v23, %v3529_v20 }
  0x38   : > { %v778_v31 = vcombine.high %v770_v24, %v770_v24  ;;  %v959_v32 = vcombine.low %v951_v26, %v958_v21  ;;  %v968_v33 = vrot.slane %v960_v27, %v3529_v20  ;;  %v3199_v43 = vpack.c.bf16 %v2959_v42, %v2958_v41 }
  0x39   : > { %3128 = vmatprep.mubr.msk.f32.mxu0 %vm313_vm0, %v942_v25  ;;  %v977_v34 = vcombine.low %v761_v28, %v770_v24  ;;  %v975_v35 = vrot.slane %v961_v29, %v3529_v20  ;;  %v3211_v46 = vpack.c.bf16 %v2978_v45, %v2977_v44  ;;  %v3215_v56 = vpack.c.bf16 %v2980_v53, %v2979_v52 }
  0x3a   : > { %v978_v36 = vcombine.low %v778_v31, %v777_v30  ;;  %3129 = vmatmul.mubr.msk.f32.gmra.mrb[10].mxu0 %vm313_vm0, %v959_v32  ;;  %3200 = vmatprep.subr.bf16.mxu1 %v3199_v43  ;;  %v3680_v52 = vsub.s32 0, %v3508_v12 }
  0x3b   : > { %v985_v37 = vrot.slane %v977_v34, %v3529_v20  ;;  %v976_v38 = vcombine.low %v968_v33, %v975_v35  ;;  %3202 = vmatpush3.bf16.msra.mxu1 %v3199_v43  ;;  %v3387_v33 = vmov 1966171168  }
  0x3c   : > { %v992_v39 = vrot.slane %v978_v36, %v3529_v20  ;;  %3212 = vmatprep.subr.bf16.mxu1 %v3211_v46  ;;  %v1549_v34 = vunpack.c.l.s4 %v3387_v33  ;;  %v2961_v36 = vld [vmem:[%s4229_s5 + $0x3] ss:$0 sm:$0xff] }
  0x3d   : > { %3131 = vmatprep.mubr.msk.f32.mxu0 %vm313_vm0, %v976_v38 }
  0x3e   : > { %v993_v40 = vcombine.low %v985_v37, %v992_v39  ;;  %v1550_v35 = vunpack.c.0.s8 %v1549_v34 }
  0x40   : > { %3132 = vmatmul.mubr.msk.f32.gmra.mrb[12].mxu0 %vm313_vm0, %v993_v40  ;;  %v3665_v37 = vsub.s32 %v1550_v35, %v3508_v12 }
  0xef   : > { %v3096_v48 = vpop.f32.mrb[0].mxu0 }
  0xf0   : > { %v392_v49 = vadd.f32 %v3096_v48, %v2953_v47  ;;  %v386_v50 = vpop.f32.mrb[1].mxu0 }
  0xf1   : > { %v387_v51 = vadd.f32 %v2953_v47, %v386_v50 }
  0xf2   : > { %v396_v54 = vmax.f32 %v392_v49, 0.0 }
  0xf3   : > { %v395_v55 = vmax.f32 %v387_v51, 0.0 }
  0xf5   : > { %3105 = vmatprep.mubr.msk.f32.mxu1 %vm313_vm0, %v395_v55 }
  0xf6   : > { %3106 = vmatmul.mubr.msk.f32.vlgmr.msra.gmra.mrb[0].mxu1 %vm313_vm0, %v396_v54  ;;  %v3685_v54 = vld [vmem:[%s4229_s5 + $0x1] ss:$0 sm:$0xff] }
  0xf7   : > { %3214 = vmatpush3.bf16.msra.mxu1 %v3211_v46 }
  0xf8   : > { %3216 = vmatprep.subr.bf16.mxu1 %v3215_v56 }
  0xfa   : > { %v3118_v58 = vpop.f32.mrb[2].mxu0 }
  0xfb   : > { %v1090_v59 = vadd.f32 %v3118_v58, %v2964_v57  ;;  %v1084_v60 = vpop.f32.mrb[3].mxu0  ;;  %3218 = vmatpush3.bf16.msra.mxu1 %v3215_v56 }
  0xfc   : > { %v1085_v61 = vadd.f32 %v2964_v57, %v1084_v60 }
  0xfd   : > { %v1144_v63 = vmax.f32 %v1090_v59, 0.0 }
  0xfe   : > { %v1143_v62 = vmax.f32 %v1085_v61, 0.0  ;;  %v3121_v0 = vpop.f32.mrb[4].mxu0 }
  0xff   : > { %v1100_v1 = vadd.f32 %v3121_v0, %v2964_v57  ;;  %v1094_v2 = vpop.f32.mrb[5].mxu0 }
 0x100   : > { %3142 = vmatprep.mubr.msk.f32.mxu1 %vm313_vm0, %v1143_v62  ;;  %v1095_v4 = vadd.f32 %v2964_v57, %v1094_v2 }
 0x101   : > { %3143 = vmatmul.mubr.msk.f32.vlgmr.msra.gmra.mrb[2].mxu1 %vm313_vm0, %v1144_v63  ;;  %v1146_v6 = vmax.f32 %v1100_v1, 0.0 }
 0x102   : > { %v1145_v5 = vmax.f32 %v1095_v4, 0.0 }
 0x104   : > { %v3124_v7 = vpop.f32.mrb[6].mxu0  ;;  %3145 = vmatprep.mubr.msk.f32.mxu1 %vm313_vm0, %v1145_v5 }
 0x105   : > { %v1110_v8 = vadd.f32 %v3124_v7, %v2964_v57  ;;  %v1104_v9 = vpop.f32.mrb[7].mxu0  ;;  %3146 = vmatmul.mubr.msk.f32.gmra.mrb[4].mxu1 %vm313_vm0, %v1146_v6 }
 0x106   : > { %v1105_v10 = vadd.f32 %v2964_v57, %v1104_v9 }
 0x107   : > { %v1148_v13 = vmax.f32 %v1110_v8, 0.0 }
 0x108   : > { %v1147_v11 = vmax.f32 %v1105_v10, 0.0  ;;  %v3127_v14 = vpop.f32.mrb[8].mxu0 }
 0x109   : > { %v1120_v15 = vadd.f32 %v3127_v14, %v2964_v57  ;;  %v1114_v16 = vpop.f32.mrb[9].mxu0 }
 0x10a   : > { %3148 = vmatprep.mubr.msk.f32.mxu1 %vm313_vm0, %v1147_v11  ;;  %v1115_v17 = vadd.f32 %v2964_v57, %v1114_v16 }
 0x10b   : > { %3149 = vmatmul.mubr.msk.f32.gmra.mrb[6].mxu1 %vm313_vm0, %v1148_v13  ;;  %v1150_v19 = vmax.f32 %v1120_v15, 0.0 }
 0x10c   : > { %v1149_v18 = vmax.f32 %v1115_v17, 0.0 }
 0x10d   : > { %v3130_v21 = vpop.f32.mrb[10].mxu0 }
 0x10e   : > { %v1130_v22 = vadd.f32 %v3130_v21, %v2964_v57  ;;  %v1124_v23 = vpop.f32.mrb[11].mxu0  ;;  %3151 = vmatprep.mubr.msk.f32.mxu1 %vm313_vm0, %v1149_v18 }
 0x10f   : > { %v1125_v24 = vadd.f32 %v2964_v57, %v1124_v23  ;;  %3152 = vmatmul.mubr.msk.f32.gmra.mrb[8].mxu1 %vm313_vm0, %v1150_v19 }
 0x110   : > { %v1152_v25 = vmax.f32 %v1130_v22, 0.0 }
 0x111   : > { %v1151_v26 = vmax.f32 %v1125_v24, 0.0 }
 0x113   : > { %v3133_v27 = vpop.f32.mrb[12].mxu0  ;;  %3154 = vmatprep.mubr.msk.f32.mxu1 %vm313_vm0, %v1151_v26 }
 0x114   : > { %v1140_v28 = vadd.f32 %v3133_v27, %v2964_v57  ;;  %v1134_v29 = vpop.f32.mrb[13].mxu0  ;;  %3155 = vmatmul.mubr.msk.f32.gmra.mrb[10].mxu1 %vm313_vm0, %v1152_v25 }
 0x115   : > { %v1135_v30 = vadd.f32 %v2964_v57, %v1134_v29 }
 0x116   : > { %v1154_v31 = vmax.f32 %v1140_v28, 0.0 }
 0x117   : > { %v1153_v32 = vmax.f32 %v1135_v30, 0.0 }
 0x119   : > { %3157 = vmatprep.mubr.msk.f32.mxu1 %vm313_vm0, %v1153_v32 }
 0x11a   : > { %3158 = vmatmul.mubr.msk.f32.gmra.mrb[12].mxu1 %vm313_vm0, %v1154_v31 }
 0x1c9   : > { %v3107_v38 = vpop.f32.mrb[0].mxu1 }
 0x1ca   : > { %v488_v39 = vadd.f32 %v3107_v38, %v2961_v36  ;;  %v482_v40 = vpop.f32.mrb[1].mxu1 }
 0x1cb   : > { %v483_v41 = vadd.f32 %v2961_v36, %v482_v40 }
 0x1cc   : > { %v1596_v42 = vcombine.high %v488_v39, %v488_v39  ;;  %v1603_v43 = vrot.slane %v488_v39, %v3665_v37 }
 0x1cd   : > { %v1547_v44 = vcombine.high %v483_v41, %v483_v41  ;;  %v1554_v45 = vrot.slane %v483_v41, %v3665_v37 }
 0x1ce   : > { %v3670_v46 = vrot.slane %v1596_v42, %v3665_v37  ;;  %v1611_v47 = vcombine.high %v1603_v43, %v1603_v43  ;;  %v3673_v48 = vrot.slane %v1603_v43, %v3665_v37 }
 0x1cf   : > { %v1561_v49 = vrot.slane %v1547_v44, %v3665_v37  ;;  %v1562_v50 = vcombine.high %v1554_v45, %v1554_v45  ;;  %v3677_v51 = vrot.slane %v1554_v45, %v3665_v37 }
 0x1d0   : > { %v1641_v56 = vcombine.high %v3673_v48, %v3673_v48  ;;  %v3693_v57 = vrot.slane %v1611_v47, %v3665_v37  ;;  %v3699_v59 = vrot.slane %v3670_v46, %v3665_v37  ;;  %v1612_v62 = vcombine.high %v3670_v46, %v3670_v46 }
 0x1d1   : > { %v1563_v53 = vcombine.high %v1561_v49, %v1561_v49  ;;  %v3688_v55 = vrot.slane %v1562_v50, %v3665_v37  ;;  %v1592_v58 = vcombine.high %v3677_v51, %v3677_v51  ;;  %v3702_v61 = vrot.slane %v1561_v49, %v3665_v37 }
 0x1d2   : > { %v1648_v1 = vrot.slane %v3677_v51, %v3680_v52  ;;  %v3713_v5 = vrot.slane %v1641_v56, %v3680_v52  ;;  %v1684_v7 = vrot.slane %v3693_v57, %v3680_v52  ;;  %v1696_v11 = vrot.slane %v3699_v59, %v3680_v52 }
 0x1d3   : > { %v1594_v2 = vcombine.high %v3688_v55, %v3688_v55  ;;  %v3716_v6 = vrot.slane %v1563_v53, %v3665_v37  ;;  %v3722_v10 = vrot.slane %v1592_v58, %v3680_v52  ;;  %v1652_v15 = vrot.slane %v3688_v55, %v3680_v52 }
 0x1d4   : > { %v3144_v60 = vpop.f32.mrb[2].mxu1  ;;  %v1664_v16 = vrot.slane %v3702_v61, %v3680_v52  ;;  %v1593_v21 = vcombine.high %v3702_v61, %v3702_v61  ;;  %v1680_v22 = vrot.slane %v3673_v48, %v3680_v52  ;;  %v1643_v31 = vcombine.high %v3693_v57, %v3693_v57 }
 0x1d5   : > { %v1276_v63 = vadd.f32 %v3144_v60, %v3685_v54  ;;  %v1270_v0 = vpop.f32.mrb[3].mxu1  ;;  %v3733_v19 = vrot.slane %v1594_v2, %v3680_v52  ;;  %v1668_v27 = vrot.slane %v3716_v6, %v3680_v52  ;;  %v1642_v57 = vcombine.high %v3699_v59, %v3699_v59 }
 0x1d6   : > { %v1271_v4 = vadd.f32 %v3685_v54, %v1270_v0  ;;  %v3758_v53 = vrot.slane %v1593_v21, %v3680_v52 }
 0x1d7   : > { %v1358_v8 = vcombine.high %v1276_v63, %v1276_v63  ;;  %v1365_v9 = vrot.slane %v1276_v63, %v3529_v20 }
 0x1d8   : > { %v1341_v13 = vcombine.high %v1271_v4, %v1271_v4  ;;  %v1348_v14 = vrot.slane %v1271_v4, %v3529_v20  ;;  %v3147_v18 = vpop.f32.mrb[4].mxu1 }
 0x1d9   : > { %v1372_v17 = vrot.slane %v1358_v8, %v3529_v20  ;;  %v1286_v25 = vadd.f32 %v3147_v18, %v3685_v54  ;;  %v1280_v26 = vpop.f32.mrb[5].mxu1  ;;  %v1373_v28 = vcombine.high %v1365_v9, %v1365_v9 }
 0x1da   : > { %v1355_v23 = vrot.slane %v1341_v13, %v3529_v20  ;;  %v1356_v24 = vcombine.high %v1348_v14, %v1348_v14  ;;  %v1281_v30 = vadd.f32 %v3685_v54, %v1280_v26 }
 0x1db   : > { %v1374_v29 = vcombine.high %v1372_v17, %v1372_v17  ;;  %v1392_v34 = vcombine.high %v1286_v25, %v1286_v25  ;;  %v1399_v35 = vrot.slane %v1286_v25, %v3529_v20  ;;  %v1755_v63 = vrot.slane %v1373_v28, %v3529_v20 }
 0x1dc   : > { %v1357_v32 = vcombine.high %v1355_v23, %v1355_v23  ;;  %v1725_v33 = vcombine.low %v1348_v14, %v1356_v24  ;;  %v1375_v38 = vcombine.high %v1281_v30, %v1281_v30  ;;  %v1382_v39 = vrot.slane %v1281_v30, %v3529_v20 }
 0x1dd   : > { %v1757_v36 = vcombine.low %v1372_v17, %v1374_v29  ;;  %v1739_v40 = vrot.slane %v1355_v23, %v3529_v20  ;;  %v3750_v41 = vrot.slane %v1392_v34, %v3529_v20  ;;  %v1407_v42 = vcombine.high %v1399_v35, %v1399_v35 }
 0x1de   : > { %v3150_v43 = vpop.f32.mrb[6].mxu1  ;;  %v1732_v44 = vrot.slane %v1725_v33, %v3529_v20  ;;  %v1741_v45 = vcombine.low %v1357_v32, %v1365_v9  ;;  %v3754_v47 = vrot.slane %v1375_v38, %v3529_v20  ;;  %v1390_v49 = vcombine.high %v1382_v39, %v1382_v39 }
 0x1df   : > { %v1296_v50 = vadd.f32 %v3150_v43, %v3685_v54  ;;  %v1290_v51 = vpop.f32.mrb[7].mxu1  ;;  %v1408_v58 = vcombine.high %v3750_v41, %v3750_v41  ;;  %v1789_v0 = vcombine.low %v1399_v35, %v1407_v42  ;;  %v1771_v2 = vrot.slane %v1382_v39, %v3529_v20 }
 0x1e0   : > { %v1291_v56 = vadd.f32 %v3685_v54, %v1290_v51  ;;  %v3763_v60 = vcombine.low %v1732_v44, %v1739_v40  ;;  %v1764_v17 = vrot.slane %v1757_v36, %v3529_v20  ;;  %v1391_v18 = vcombine.high %v3754_v47, %v3754_v47 }
 0x1e1   : > { %v1426_v4 = vcombine.high %v1296_v50, %v1296_v50  ;;  %v3768_v8 = vrot.slane %v1296_v50, %v3529_v20  ;;  %v3778_v21 = vcombine.low %v1390_v49, %v3754_v47  ;;  %v1748_v25 = vrot.slane %v1741_v45, %v3529_v20 }
 0x1e2   : > { %v1409_v9 = vcombine.high %v1291_v56, %v1291_v56  ;;  %v3771_v13 = vrot.slane %v1291_v56, %v3529_v20  ;;  %v1997_v14 = vmul.f32 %v3763_v60, %v1648_v1  ;;  %v3153_v24 = vpop.f32.mrb[8].mxu1  ;;  %v3799_v40 = vcombine.low %v1764_v17, %v1771_v2 }
 0x1e3   : > { %v3781_v23 = vrot.slane %v1426_v4, %v3529_v20  ;;  %v1441_v26 = vcombine.high %v3768_v8, %v3768_v8  ;;  %v1306_v29 = vadd.f32 %v3153_v24, %v3685_v54  ;;  %v1300_v30 = vpop.f32.mrb[9].mxu1  ;;  %v1835_v32 = vrot.slane %v3768_v8, %v3529_v20 }
 0x1e4   : > { %v1423_v28 = vrot.slane %v1409_v9, %v3529_v20  ;;  %v3788_v1 = vcombine.low %v1408_v58, %v3771_v13  ;;  %v1424_v33 = vcombine.high %v3771_v13, %v3771_v13  ;;  %v1301_v34 = vadd.f32 %v3685_v54, %v1300_v30 }
 0x1e5   : > { %v2014_v35 = vsel %vm2013_vm1, %v1997_v14, 0.0  ;;  %v1442_v36 = vcombine.high %v3781_v23, %v3781_v23  ;;  %v1460_v39 = vcombine.high %v1306_v29, %v1306_v29  ;;  %v3802_v42 = vrot.slane %v1306_v29, %v3529_v20 }
 0x1e6   : > { %v1425_v38 = vcombine.high %v1423_v28, %v1423_v28  ;;  %2015 = vadd.xlane.f32.xlu0 %v2014_v35  ;;  %v1443_v43 = vcombine.high %v1301_v34, %v1301_v34  ;;  %v1450_v44 = vrot.slane %v1301_v34, %v3529_v20  ;;  %v3805_v45 = vcombine.low %v1748_v25, %v1755_v63 }
 0x1e7   : > { %v3808_v49 = vcombine.low %v1441_v26, %v3781_v23  ;;  %v1474_v50 = vrot.slane %v1460_v39, %v3529_v20  ;;  %v3156_v51 = vpop.f32.mrb[10].mxu1  ;;  %v1999_v56 = vmul.f32 %v3799_v40, %v3722_v10  ;;  %v1796_v58 = vrot.slane %v1789_v0, %v3529_v20 }
 0x1e8   : > { %v3815_v2 = vrot.slane %v1443_v43, %v3529_v20  ;;  %v1458_v4 = vcombine.high %v1450_v44, %v1450_v44  ;;  %v1316_v9 = vadd.f32 %v3156_v51, %v3685_v54  ;;  %v1310_v14 = vpop.f32.mrb[11].mxu1  ;;  %v1998_v63 = vmul.f32 %v3805_v45, %v1652_v15 }
 0x1e9   : > { %v3822_v17 = vcombine.low %v1423_v28, %v1425_v38  ;;  %v1476_v24 = vcombine.high %v1474_v50, %v1474_v50  ;;  %v1311_v25 = vadd.f32 %v3685_v54, %v1310_v14  ;;  %v2020_v10 = vsel %vm2013_vm1, %v1999_v56, 0.0 }
 0x1ea   : > { %v1475_v0 = vcombine.high %v3802_v42, %v3802_v42  ;;  %v1494_v26 = vcombine.high %v1316_v9, %v1316_v9  ;;  %v1501_v29 = vrot.slane %v1316_v9, %v3529_v20  ;;  %2021 = vadd.xlane.f32.xlu1 %v2020_v10  ;;  %v1803_v30 = vrot.slane %v3750_v41, %v3529_v20 }
 0x1eb   : > { %v1459_v55 = vcombine.high %v3815_v2, %v3815_v2  ;;  %v1477_v15 = vcombine.high %v1311_v25, %v1311_v25  ;;  %v1484_v28 = vrot.slane %v1311_v25, %v3529_v20  ;;  %v2017_v34 = vsel %vm2013_vm1, %v1998_v63, 0.0 }
 0x1ec   : > { %v3835_v35 = vcombine.low %v1450_v44, %v1458_v4  ;;  %v1508_v38 = vrot.slane %v1494_v26, %v3529_v20  ;;  %v1509_v39 = vcombine.high %v1501_v29, %v1501_v29  ;;  %2018 = vadd.xlane.f32.xlu0 %v2017_v34  ;;  %v3838_v51 = vcombine.low %v1796_v58, %v1803_v30 }
 0x1ed   : > { %v3159_v43 = vpop.f32.mrb[12].mxu1  ;;  %v1885_v56 = vcombine.low %v1474_v50, %v1476_v24  ;;  %v1491_v41 = vrot.slane %v1477_v15, %v3529_v20  ;;  %v1780_v25 = vrot.slane %v3778_v21, %v3529_v20  ;;  %v1492_v10 = vcombine.high %v1484_v28, %v1484_v28 }
 0x1ee   : > { %v1326_v9 = vadd.f32 %v3159_v43, %v3685_v54  ;;  %v1320_v14 = vpop.f32.mrb[13].mxu1  ;;  %v1510_v4 = vcombine.high %v1508_v38, %v1508_v38  ;;  %v2001_v63 = vmul.f32 %v3838_v51, %v1664_v16  ;;  %v1917_v58 = vcombine.low %v1501_v29, %v1509_v39 }
 0x1ef   : > { %v1321_v44 = vadd.f32 %v3685_v54, %v1320_v14  ;;  %v1899_v50 = vrot.slane %v1484_v28, %v3529_v20  ;;  %v1787_v54 = vrot.slane %v1391_v18, %v3529_v20  ;;  %v1493_v61 = vcombine.high %v1491_v41, %v1491_v41 }
 0x1f0   : > { %v1528_v24 = vcombine.high %v1326_v9, %v1326_v9  ;;  %v3851_v26 = vrot.slane %v1326_v9, %v3529_v20  ;;  %v2026_v21 = vsel %vm2013_vm1, %v2001_v63, 0.0  ;;  %v1892_v28 = vrot.slane %v1885_v56, %v3529_v20 }
 0x1f1   : > { %v1511_v30 = vcombine.high %v1321_v44, %v1321_v44  ;;  %v1518_v15 = vrot.slane %v1321_v44, %v3529_v20  ;;  %2027 = vadd.xlane.f32.xlu1 %v2026_v21  ;;  %v1901_v34 = vcombine.low %v1492_v10, %v1491_v41  ;;  %v3864_v9 = vcombine.low %v1780_v25, %v1787_v54 }
 0x1f2   : > { %v1542_v16 = vrot.slane %v1528_v24, %v3529_v20  ;;  %v1543_v29 = vcombine.high %v3851_v26, %v3851_v26  ;;  %v3866_v63 = vcombine.low %v1892_v28, %v1899_v50  ;;  %v1812_v47 = vrot.slane %v3788_v1, %v3529_v20 }
 0x1f3   : > { %v1525_v39 = vrot.slane %v1511_v30, %v3529_v20  ;;  %v1933_v43 = vcombine.low %v1510_v4, %v1518_v15  ;;  %v1526_v44 = vcombine.high %v1518_v15, %v1518_v15  ;;  %v2000_v24 = vmul.f32 %v3864_v9, %v3733_v19 }
 0x1f4   : > { %v1544_v14 = vcombine.high %v1542_v16, %v1542_v16  ;;  %v1965_v18 = vcombine.low %v1543_v29, %v1542_v16  ;;  %v1819_v56 = vrot.slane %v1424_v33, %v3529_v20  ;;  %v1869_v41 = vcombine.low %v1459_v55, %v3802_v42 }
 0x1f5   : > { %v1527_v25 = vcombine.high %v1525_v39, %v1525_v39  ;;  %v2007_v10 = vmul.f32 %v3866_v63, %v3713_v5  ;;  %v1828_v4 = vrot.slane %v3822_v17, %v3529_v20  ;;  %v1924_v1 = vrot.slane %v1917_v58, %v3529_v20 }
 0x1f6   : > { %v2023_v50 = vsel %vm2013_vm1, %v2000_v24, 0.0  ;;  %v3883_v30 = vcombine.low %v1812_v47, %v1819_v56  ;;  %v1876_v19 = vrot.slane %v1869_v41, %v3529_v20  ;;  %v1883_v13 = vrot.slane %v1475_v0, %v3529_v20 }
 0x1f7   : > { %2024 = vadd.xlane.f32.xlu1 %v2023_v50  ;;  %v2044_v33 = vsel %vm2013_vm1, %v2007_v10, 0.0  ;;  %v3891_v5 = vcombine.low %v1828_v4, %v1835_v32  ;;  %v1931_v42 = vrot.slane %v1508_v38, %v3529_v20  ;;  %v1860_v17 = vrot.slane %v3835_v35, %v3529_v20 }
 0x1f8   : > { %2045 = vadd.xlane.f32.xlu0 %v2044_v33  ;;  %v2002_v55 = vmul.f32 %v3883_v30, %v1668_v27  ;;  %v3900_v0 = vcombine.low %v1876_v19, %v1883_v13  ;;  %v1867_v58 = vrot.slane %v3815_v2, %v3529_v20  ;;  %v1908_v8 = vrot.slane %v1901_v34, %v3529_v20 }
 0x1f9   : > { %v2003_v32 = vmul.f32 %v3891_v5, %v3758_v53  ;;  %v3907_v38 = vcombine.low %v1924_v1, %v1931_v42  ;;  %v1915_v35 = vrot.slane %v1493_v61, %v3529_v20  ;;  %v1844_v15 = vrot.slane %v3808_v49, %v3529_v20 }
 0x1fa   : > { %v2029_v21 = vsel %vm2013_vm1, %v2002_v55, 0.0  ;;  %v2006_v27 = vmul.f32 %v3900_v0, %v1684_v7  ;;  %v3917_v2 = vcombine.low %v1860_v17, %v1867_v58  ;;  %v1851_v53 = vrot.slane %v1442_v36, %v3529_v20 }
 0x1fb   : > { %v1949_v54 = vcombine.low %v1525_v39, %v1527_v25  ;;  %2030 = vadd.xlane.f32.xlu1 %v2029_v21  ;;  %v1595_v61 = vcombine.high %v3716_v6, %v3716_v6  ;;  %v1640_v49 = vrot.slane %v1612_v62, %v3665_v37  ;;  %v1940_v16 = vrot.slane %v1933_v43, %v3529_v20 }
 0x1fc   : > { %v2041_v7 = vsel %vm2013_vm1, %v2006_v27, 0.0  ;;  %v2009_v23 = vmul.f32 %v3907_v38, %v1696_v11  ;;  %v3935_v36 = vcombine.low %v1908_v8, %v1915_v35  ;;  %v1947_v29 = vrot.slane %v1526_v44, %v3529_v20 }
 0x1fd   : > { %v1963_v6 = vrot.slane %v3851_v26, %v3529_v20  ;;  %2042 = vadd.xlane.f32.xlu0 %v2041_v7  ;;  %v2032_v46 = vsel %vm2013_vm1, %v2003_v32, 0.0  ;;  %v2005_v37 = vmul.f32 %v3917_v2, %v1680_v22  ;;  %v1692_v62 = vrot.slane %v1643_v31, %v3680_v52 }
 0x1fe   : > { %v3949_v11 = vcombine.low %v1844_v15, %v1851_v53  ;;  %v3951_v28 = vcombine.low %v1940_v16, %v1947_v29  ;;  %v1972_v34 = vrot.slane %v1965_v18, %v3529_v20  ;;  %v1979_v26 = vrot.slane %v1544_v14, %v3529_v20 }
 0x1ff   : > { %2033 = vadd.xlane.f32.xlu1 %v2032_v46  ;;  %v1956_v39 = vrot.slane %v1949_v54, %v3529_v20  ;;  %v2050_v48 = vsel %vm2013_vm1, %v2009_v23, 0.0  ;;  %v2008_v22 = vmul.f32 %v3935_v36, %v1692_v62  ;;  %v1676_v43 = vrot.slane %v1595_v61, %v3680_v52 }
 0x200   : > { %v1644_v44 = vcombine.high %v1640_v49, %v1640_v49  ;;  %v2038_v47 = vsel %vm2013_vm1, %v2005_v37, 0.0  ;;  %v1700_v18 = vrot.slane %v1640_v49, %v3680_v52  ;;  %v3966_v20 = vcombine.low %v1972_v34, %v1979_v26 }
 0x201   : > { %2051 = vadd.xlane.f32.xlu0 %v2050_v48  ;;  %v3961_v31 = vcombine.low %v1956_v39, %v1963_v6  ;;  %v2004_v14 = vmul.f32 %v3949_v11, %v1676_v43  ;;  %v2047_v24 = vsel %vm2013_vm1, %v2008_v22, 0.0  ;;  %v1704_v10 = vrot.slane %v1642_v57, %v3680_v52 }
 0x202   : > { %v2010_v56 = vmul.f32 %v3951_v28, %v1700_v18  ;;  %v1708_v41 = vrot.slane %v1644_v44, %v3680_v52  ;;  %v3979_v55 = vand.u32 127, %v527_v3 }
 0x203   : > { %2039 = vadd.xlane.f32.xlu1 %v2038_v47  ;;  %v2035_v59 = vsel %vm2013_vm1, %v2004_v14, 0.0  ;;  %v2011_v1 = vmul.f32 %v3961_v31, %v1704_v10 }
 0x204   : > { %v2012_v25 = vmul.f32 %v3966_v20, %v1708_v41  ;;  %v2053_v4 = vsel %vm2013_vm1, %v2010_v56, 0.0  ;;  %v2090_v32 = vsub.s32 %v3979_v55, %v3508_v12  ;;  %vm2212_vm12 = vcmp.le.s32.totalorder %v3508_v12, %v3979_v55 }
 0x205   : > { %2048 = vadd.xlane.f32.xlu0 %v2047_v24  ;;  %v2056_v19 = vsel %vm2013_vm1, %v2011_v1, 0.0 }
 0x206   : > { %v2059_v50 = vsel %vm2013_vm1, %v2012_v25, 0.0 }
 0x207   : > { %2036 = vadd.xlane.f32.xlu1 %v2035_v59 }
 0x209   : > { %2054 = vadd.xlane.f32.xlu0 %v2053_v4 }
 0x20b   : > { %2060 = vadd.xlane.f32.xlu1 %v2059_v50 }
 0x20d   : > { %2057 = vadd.xlane.f32.xlu0 %v2056_v19 }
 0x273   : > { %v2016_v33 = vpop.xlane.xlu0 %2015 }
 0x274   : > { %v2091_v27 = vrot.slane %v2016_v33, %v2090_v32 }
 0x277   : > { %v2022_v13 = vpop.xlane.xlu1 %2021 }
 0x278   : > { %v2099_v49 = vrot.slane %v2022_v13, %v2090_v32 }
 0x279   : > { %v2019_v17 = vpop.xlane.xlu0 %2018 }
 0x27a   : > { %v2095_v15 = vrot.slane %v2019_v17, %v2090_v32 }
 0x27c   : > { %v2153_v54 = vsel %vm2152_vm2, %v2095_v15, %v2091_v27 }
 0x27d   : > { %v2155_v16 = vsel %vm2154_vm3, %v2099_v49, %v2153_v54 }
 0x27e   : > { %v2028_v42 = vpop.xlane.xlu1 %2027 }
 0x27f   : > { %v2107_v46 = vrot.slane %v2028_v42, %v2090_v32 }
 0x284   : > { %v2025_v58 = vpop.xlane.xlu1 %2024 }
 0x285   : > { %v2046_v8 = vpop.xlane.xlu0 %2045  ;;  %v2103_v61 = vrot.slane %v2025_v58, %v2090_v32  ;;  %v4013_v58 = vld [vmem:[%s295_s17] sm:$0xff] }
 0x286   : > { %v2131_v43 = vrot.slane %v2046_v8, %v2090_v32  ;;  %v2065_v8 = vstv %s2064_s27  ;;  %s3026_s27 = sshll.u32 %s3455_s3, 8  ;;  %s3322_s3 = scalar_lea.vmem %s4177_s29, 256 }
 0x287   : > { %v2157_v23 = vsel %vm2156_vm4, %v2103_v61, %v2155_v16  ;;  %p3323_p12 = scmp.ne.s32.totalorder %s4177_s29, %s3322_s3  ;;  %p3330_p2 = scmp.lt.s32.totalorder %s3328_s11, %s3322_s3 }
 0x288   : > { %v2031_v35 = vpop.xlane.xlu1 %2030  ;;  %v2159_v26 = vsel %vm2158_vm5, %v2107_v46, %v2157_v23 }
 0x289   : > { %v2111_v29 = vrot.slane %v2031_v35, %v2090_v32  ;;  %v4016_v35 = vld [vmem:[%s295_s17 + $0x8] sm:$0xff]  ;;  %p3324_p13 = pnand %p3323_p12, %p3472_p5  ;;  %p3331_p3 = por %p3330_p2, %p3329_p1 }
 0x28a   : > { %v2043_v21 = vpop.xlane.xlu0 %2042  ;;  %v2067_v27 = vmax.f32 %v4016_v35, %v2065_v8 }
 0x28b   : > { %v2127_v37 = vrot.slane %v2043_v21, %v2090_v32  ;;  %v2161_v44 = vsel %vm2160_vm6, %v2111_v29, %v2159_v26  ;;  %p3325_p0 = pneg %p3324_p13 }
 0x28c   : > { %v2034_v53 = vpop.xlane.xlu1 %2033  ;;  %vm2069_vm11 = vcmp.gt.f32.partialorder %v2067_v27, 0.5 }
 0x28d   : > { %v2115_v62 = vrot.slane %v2034_v53, %v2090_v32  ;;  %p3332_p4 = pnand %p3331_p3, %p3325_p0 }
 0x28e   : > { %v2052_v3 = vpop.xlane.xlu0 %2051 }
 0x28f   : > { %v2163_v14 = vsel %vm2162_vm7, %v2115_v62, %v2161_v44  ;;  %v2139_v25 = vrot.slane %v2052_v3, %v2090_v32  ;;  %v3388_v3 = vmov 0.0  }
 0x290   : > { %v2040_v7 = vpop.xlane.xlu1 %2039  ;;  %v2995_v16 = vsel %vm2212_vm12, 1.0, %v3388_v3  ;;  %vm2791_vm12 = vcmp.eq.f32.partialorder %v4016_v35, 1.0 }
 0x291   : > { %v2123_v6 = vrot.slane %v2040_v7, %v2090_v32  ;;  %3160 = vmatprep.subr.msk.mxu0 %vm2221_vm13, %v2995_v16 }
 0x292   : > { %v2049_v34 = vpop.xlane.xlu0 %2048  ;;  %3161 = vmatpush3.msk.msra.mxu0 %vm2221_vm13, %v2995_v16  ;;  %vm2818_vm13 = vcmask 97328  }
 0x293   : > { %v2166_v39 = vsel %vm2152_vm2, %v2127_v37, %v2123_v6  ;;  %v2135_v48 = vrot.slane %v2049_v34, %v2090_v32 }
 0x294   : > { %v2037_v22 = vpop.xlane.xlu1 %2036  ;;  %v2167_v18 = vsel %vm2154_vm3, %v2131_v43, %v2166_v39 }
 0x295   : > { %v2119_v57 = vrot.slane %v2037_v22, %v2090_v32  ;;  %v2168_v56 = vsel %vm2156_vm4, %v2135_v48, %v2167_v18 }
 0x296   : > { %v2055_v47 = vpop.xlane.xlu0 %2054  ;;  %v2169_v1 = vsel %vm2158_vm5, %v2139_v25, %v2168_v56 }
 0x297   : > { %v2165_v24 = vsel %vm2164_vm8, %v2119_v57, %v2163_v14  ;;  %v2143_v41 = vrot.slane %v2055_v47, %v2090_v32  ;;  %v3389_v57 = vmov 7  }
 0x298   : > { %v2176_v59 = vsel %vm2175_vm9, %v2165_v24, inf  ;;  %2810 = vst.msk [vmem:[%s3997_s22] sm:$0xff] %vm2175_vm9, %v2165_v24  ;;  %v2061_v10 = vpop.xlane.xlu1 %2060  ;;  %3288 = vset.pattern.permute.xlu1 %v3389_v57  ;;  %3287 = vset.pattern.permute.xlu0 %v3389_v57 }
 0x299   : > { %2177 = vmin.xlane.f32.xlu0 %v2176_v59  ;;  %v2170_v19 = vsel %vm2160_vm6, %v2143_v41, %v2169_v1  ;;  %v2151_v13 = vrot.slane %v2061_v10, %v2090_v32 }
 0x29a   : > { %v2058_v4 = vpop.xlane.xlu0 %2057 }
 0x29b   : > { %v2147_v50 = vrot.slane %v2058_v4, %v2090_v32  ;;  %v2066_v32 = vmax.f32 %v4013_v58, %v2065_v8 }
 0x29d   : > { %v2171_v33 = vsel %vm2162_vm7, %v2147_v50, %v2170_v19  ;;  %vm2068_vm10 = vcmp.gt.f32.partialorder %v2066_v32, 0.5 }
 0x29e   : > { %v2172_v42 = vsel %vm2164_vm8, %v2151_v13, %v2171_v33  ;;  %v3390_v33 = vmov 6  }
 0x29f   : > { %v2179_v17 = vsel %vm2175_vm9, %v2172_v42, inf  ;;  %2811 = vst.msk [vmem:[%s3997_s22 + $0x8] sm:$0xff] %vm2175_vm9, %v2172_v42 }
 0x2a0   : > { %2180 = vmin.xlane.f32.xlu1 %v2179_v17 }
 0x326   : > { %v2178_v15 = vpop.xlane.xlu0 %2177 }
 0x327   : > { %v2182_v21 = vsel %vm2068_vm10, %v2165_v24, %v2178_v15 }
 0x328   : > { %v2184_v53 = vsel %vm2175_vm9, %v2182_v21, -inf }
 0x329   : > { %2185 = vmax.xlane.f32.xlu0 %v2184_v53  ;;  %v2341_v53 = vsub.s32 1, %v3508_v12 }
 0x32d   : > { %v2181_v54 = vpop.xlane.xlu1 %2180 }
 0x32e   : > { %v2183_v61 = vsel %vm2069_vm11, %v2172_v42, %v2181_v54 }
 0x32f   : > { %v2187_v49 = vsel %vm2175_vm9, %v2183_v61, -inf }
 0x330   : > { %2188 = vmax.xlane.f32.xlu1 %v2187_v49 }
 0x3b6   : > { %v2186_v7 = vpop.xlane.xlu0 %2185 }
 0x3b7   : > { %v2190_v23 = vsub.f32 %v2182_v21, %v2186_v7  ;;  %v2348_v7 = vsub.s32 2, %v3508_v12 }
 0x3b9   : > { %v2192_v29 = vmul.f32 %v2190_v23, %v2066_v32  ;;  %v2369_v23 = vsub.s32 5, %v3508_v12 }
 0x3bb   : > { %v2194_v6 = vmul.f32 1.442695, %v2192_v29 }
 0x3bd   : > { %3312 = vpow2.f32 %v2194_v6  ;;  %v2189_v46 = vpop.xlane.xlu1 %2188 }
 0x3be   : > { %v2191_v37 = vsub.f32 %v2183_v61, %v2189_v46 }
 0x3c0   : > { %v2193_v62 = vmul.f32 %v2191_v37, %v2067_v27  ;;  %v2355_v37 = vsub.s32 3, %v3508_v12 }
 0x3c2   : > { %v2196_v34 = vmul.f32 1.442695, %v2193_v62  ;;  %v2376_v62 = vsub.s32 6, %v3508_v12 }
 0x3c4   : > { %3314 = vpow2.f32 %v2196_v34 }
 0x3c7   : > { %v3313_v26 = vpop.eup %3312 }
 0x3c8   : > { %v2198_v39 = vsel %vm2068_vm10, %v3313_v26, 0.0  ;;  %v2362_v26 = vsub.s32 4, %v3508_v12 }
 0x3c9   : > { %v2200_v48 = vsel %vm2175_vm9, %v2198_v39, 0.0 }
 0x3ca   : > { %2201 = vadd.xlane.f32.xlu0 %v2200_v48 }
 0x3ce   : > { %v3315_v22 = vpop.eup %3314 }
 0x3cf   : > { %v2199_v43 = vsel %vm2069_vm11, %v3315_v22, 0.0  ;;  %vm2790_vm11 = vcmp.eq.f32.partialorder %v4013_v58, 1.0 }
 0x3d0   : > { %v2203_v44 = vsel %vm2175_vm9, %v2199_v43, 0.0 }
 0x3d1   : > { %2204 = vadd.xlane.f32.xlu1 %v2203_v44 }
 0x3e0   : > { %2302 = vperm.xlu0 %3287, %v4013_v58  }
 0x3e2   : > { %2307 = vperm.xlu1 %3288, %v4016_v35   ;;  %v3005_v35 = vld [vmem:[%s4228_s4 + $0x90] sm:$0xff] }
 0x3e4   : > { %3295 = vset.pattern.permute.xlu0 %v3390_v33 }
 0x3e6   : > { %3289 = vset.pattern.permute.xlu1 %v3390_v33 }
 0x457   : > { %v2202_v47 = vpop.xlane.xlu0 %2201 }
 0x458   : > { %3316 = vrcp.f32 %v2202_v47 }
 0x45e   : > { %v2205_v14 = vpop.xlane.xlu1 %2204 }
 0x45f   : > { %3318 = vrcp.f32 %v2205_v14  ;;  %v2303_v25 = vpop.permute.xlu0 %2302 }
 0x462   : > { %v3317_v18 = vpop.eup %3316  ;;  %v2308_v59 = vpop.permute.xlu1 %2307 }
 0x463   : > { %v2208_v24 = vmul.f32 %v3317_v18, %v2198_v39  ;;  %v2383_v39 = vsub.s32 7, %v3508_v12 }
 0x465   : > { %3162 = vmatprep.mubr.msk.f32.mxu0 %vm2175_vm9, %v2208_v24 }
 0x469   : > { %v3319_v56 = vpop.eup %3318 }
 0x46a   : > { %v4033_v41 = vmul.f32 %v3319_v56, %v2199_v43  ;;  %v3003_v56 = vld [vmem:[%s4228_s4 + $0x80] sm:$0xff] }
 0x46c   : > { %3163 = vmatmul.mubr.msk.f32.vlgmr.msra.gmra.mrb[14].mxu0 %vm2175_vm9, %v4033_v41 }
 0x53f   : > { %v3164_v10 = vpop.f32.mrb[14].mxu0 }
 0x540   : > { %vm2311_vm14 = vcmp.lt.f32.partialorder %v3164_v10, %v2308_v59  ;;  %v2291_v4 = vpop.f32.mrb[15].mxu0  ;;  %v3019_v59 = vsel %vm2790_vm11, 1.0, %v3388_v3 }
 0x541   : > { %vm2310_vm15 = vcmp.lt.f32.partialorder %v2291_v4, %v2303_v25  ;;  %v3000_v1 = vsel %vm2311_vm14, 1.0, %v3388_v3  ;;  %v3020_v25 = vsel %vm2791_vm12, 1.0, %v3388_v3  ;;  %v3006_v4 = vld [vmem:[%s4228_s4 + $0x98] sm:$0xff]  ;;  %vm2823_vm14 = vcmask 105568  }
 0x542   : > { %v2319_v50 = vsel %vm2175_vm9, %v3000_v1, 0.0  ;;  %v2999_v19 = vsel %vm2310_vm15, 1.0, %v3388_v3  ;;  %v3290_v58 = vpack.i.bf16 %v3020_v25, %v3019_v59  ;;  %v3223_v1 = vpack.c.bf16 %v3006_v4, %v3005_v35 }
 0x543   : > { %2320 = vadd.xlane.f32.xlu0 %v2319_v50  ;;  %v2316_v13 = vsel %vm2175_vm9, %v2999_v19, 0.0  ;;  %v3012_v50 = vld [vmem:[%s4228_s4 + $0xa8] sm:$0xff] }
 0x544   : > { %2317 = vadd.xlane.f32.xlu1 %v2316_v13 }
 0x5d0   : > { %v2321_v42 = vpop.xlane.xlu0 %2320 }
 0x5d1   : > { %v2323_v17 = vmin.f32 %v2321_v42, 5.0  ;;  %v2318_v8 = vpop.xlane.xlu1 %2317 }
 0x5d2   : > { %v2322_v32 = vmin.f32 %v2318_v8, 5.0 }
 0x5d3   : > { %v4041_v15 = vtrunc.f32 %v2323_v17 }
 0x5d4   : > { %v4043_v21 = vtrunc.f32 %v2322_v32 }
 0x5d5   : > { %v3238_v27 = vcvt.f32.s32 %v4041_v15  ;;  %v3008_v15 = vld [vmem:[%s4229_s5 + $0x4] ss:$0 sm:$0xff] }
 0x5d6   : > { %v3236_v54 = vcvt.f32.s32 %v4043_v21 }
 0x5d7   : > { %vm2327_vm9 = vcmp.eq.s32.totalorder %v3979_v55, %v3238_v27 }
 0x5d8   : > { %v3002_v61 = vsel %vm2327_vm9, 1.0, %v3388_v3  ;;  %vm2326_vm10 = vcmp.eq.s32.totalorder %v3979_v55, %v3236_v54 }
 0x5d9   : > { %v2398_v49 = vrot.slane %v3002_v61, %v2341_v53  ;;  %v2391_v16 = vrot.slane %v3002_v61, %v3680_v52  ;;  %v3001_v29 = vsel %vm2326_vm10, 1.0, %v3388_v3  ;;  %v2405_v6 = vrot.slane %v3002_v61, %v2348_v7  ;;  %v3011_v3 = vld [vmem:[%s4228_s4 + $0xa0] sm:$0xff] }
 0x5da   : > { %v2370_v46 = vrot.slane %v3001_v29, %v2369_v23  ;;  %v2412_v55 = vrot.slane %v3002_v61, %v2355_v37  ;;  %v2377_v34 = vrot.slane %v3001_v29, %v2376_v62  ;;  %v2419_v48 = vrot.slane %v3002_v61, %v2362_v26 }
 0x5db   : > { %2400 = vbcast.lane.b32.xlu1 %v2398_v49, 256  ;;  %2393 = vbcast.lane.b32.xlu0 %v2391_v16, 256  ;;  %v2384_v22 = vrot.slane %v3001_v29, %v2383_v39  ;;  %v2426_v43 = vrot.slane %v3002_v61, %v2369_v23  ;;  %v2440_v44 = vrot.slane %v3002_v61, %v2383_v39 }
 0x5dc   : > { %v2335_v57 = vrot.slane %v3001_v29, %v3680_v52  ;;  %v2342_v47 = vrot.slane %v3001_v29, %v2341_v53  ;;  %v2349_v14 = vrot.slane %v3001_v29, %v2348_v7  ;;  %v2356_v12 = vrot.slane %v3001_v29, %v2355_v37  ;;  %v3004_v52 = vld [vmem:[%s4228_s4 + $0x88] sm:$0xff] }
 0x5dd   : > { %v2363_v18 = vrot.slane %v3001_v29, %v2362_v26  ;;  %v2433_v10 = vrot.slane %v3002_v61, %v2376_v62  ;;  %v3227_v19 = vpack.c.bf16 %v3012_v50, %v3011_v3 }
 0x5df   : > { %2407 = vbcast.lane.b32.xlu1 %v2405_v6, 256  ;;  %2372 = vbcast.lane.b32.xlu0 %v2370_v46, 256 }
 0x5e0   : > { %3228 = vmatprep.subr.bf16.mxu0 %v3227_v19 }
 0x5e1   : > { %3230 = vmatpush3.bf16.msra.mxu0 %v3227_v19 }
 0x5e3   : > { %2414 = vbcast.lane.b32.xlu1 %v2412_v55, 256  ;;  %2379 = vbcast.lane.b32.xlu0 %v2377_v34, 256  ;;  %v2821_v34 = vcvt.s32.f32 %v3236_v54 }
 0x5e7   : > { %2421 = vbcast.lane.b32.xlu1 %v2419_v48, 256  ;;  %2386 = vbcast.lane.b32.xlu0 %v2384_v22, 256 }
 0x5eb   : > { %2428 = vbcast.lane.b32.xlu1 %v2426_v43, 256  ;;  %2442 = vbcast.lane.b32.xlu0 %v2440_v44, 256 }
 0x5ef   : > { %2812 = vrot.lane.b32.xlu0 %v2208_v24, %s3391_s16  ;;  %2337 = vbcast.lane.b32.xlu1 %v2335_v57, 256  ;;  %v3219_v24 = vpack.c.bf16 %v3004_v52, %v3003_v56 }
 0x5f1   : > { %3220 = vmatprep.subr.bf16.mxu1 %v3219_v24 }
 0x5f2   : > { %3222 = vmatpush3.bf16.msra.mxu1 %v3219_v24 }
 0x5f3   : > { %2344 = vbcast.lane.b32.xlu1 %v2342_v47, 256  ;;  %3224 = vmatprep.subr.bf16.mxu1 %v3223_v1 }
 0x5f6   : > { %3226 = vmatpush3.bf16.msra.mxu1 %v3223_v1 }
 0x5f7   : > { %2351 = vbcast.lane.b32.xlu1 %v2349_v14, 256 }
 0x5fb   : > { %2358 = vbcast.lane.b32.xlu1 %v2356_v12, 256 }
 0x5ff   : > { %2365 = vbcast.lane.b32.xlu1 %v2363_v18, 256 }
 0x603   : > { %2435 = vbcast.lane.b32.xlu1 %v2433_v10, 256 }
 0x607   : > { %3291 = vperm.xlu1 %3289, %v3290_v58  }
 0x60b   : > { %2814 = vrot.lane.b32.xlu1 %v4033_v41, %s3391_s16  ;;  %s4175_s16 = scalar_lea.hbm %s4230_s6, %s3026_s27 }
 0x64d   : > { %v2394_v13 = vpop.permute.xlu0 %2393  ;;  %v2401_v33 = vpop.permute.xlu1 %2400 }
 0x64e   : > { %v2452_v8 = vmul.f32 %v2394_v13, %v3917_v2  ;;  %v2453_v32 = vmul.f32 %v2401_v33, %v3900_v0 }
 0x650   : > { %v2516_v61 = vsel %vm2013_vm1, %v2452_v8, 0.0  ;;  %v2523_v49 = vsel %vm2013_vm1, %v2453_v32, 0.0 }
 0x651   : > { %v2373_v42 = vpop.permute.xlu0 %2372  ;;  %v2408_v17 = vpop.permute.xlu1 %2407  ;;  %v2517_v23 = vrot.slane %v2516_v61, 4  ;;  %v2524_v29 = vrot.slane %v2523_v49, 4 }
 0x652   : > { %v2449_v6 = vmul.f32 %v2373_v42, %v3883_v30  ;;  %v2454_v2 = vmul.f32 %v2408_v17, %v3866_v63 }
 0x653   : > { %v2518_v62 = vadd.f32 %v2517_v23, %v2516_v61  ;;  %v2525_v0 = vadd.f32 %v2524_v29, %v2523_v49 }
 0x654   : > { %v2495_v55 = vsel %vm2013_vm1, %v2449_v6, 0.0  ;;  %v2530_v22 = vsel %vm2013_vm1, %v2454_v2, 0.0 }
 0x655   : > { %v2380_v41 = vpop.permute.xlu0 %2379  ;;  %v2415_v53 = vpop.permute.xlu1 %2414  ;;  %v2519_v48 = vrot.slane %v2518_v62, 2  ;;  %v2526_v43 = vrot.slane %v2525_v0, 2  ;;  %v2496_v44 = vrot.slane %v2495_v55, 4  ;;  %v2531_v54 = vrot.slane %v2530_v22, 4 }
 0x656   : > { %v2455_v30 = vmul.f32 %v2415_v53, %v3935_v36  ;;  %v2450_v18 = vmul.f32 %v2380_v41, %v3891_v5 }
 0x657   : > { %v2520_v12 = vadd.f32 %v2519_v48, %v2518_v62  ;;  %v2527_v52 = vadd.f32 %v2526_v43, %v2525_v0  ;;  %v2497_v24 = vadd.f32 %v2496_v44, %v2495_v55  ;;  %v2532_v10 = vadd.f32 %v2531_v54, %v2530_v22 }
 0x658   : > { %v2537_v36 = vsel %vm2013_vm1, %v2455_v30, 0.0  ;;  %v2502_v1 = vsel %vm2013_vm1, %v2450_v18, 0.0 }
 0x659   : > { %v2387_v16 = vpop.permute.xlu0 %2386  ;;  %v2422_v7 = vpop.permute.xlu1 %2421  ;;  %v2538_v58 = vrot.slane %v2537_v36, 4  ;;  %v2521_v4 = vrot.slane %v2520_v12, 1  ;;  %v2528_v50 = vrot.slane %v2527_v52, 1  ;;  %v2503_v8 = vrot.slane %v2502_v1, 4 }
 0x65a   : > { %v2456_v57 = vmul.f32 %v2422_v7, %v3907_v38  ;;  %v2451_v56 = vmul.f32 %v2387_v16, %v3949_v11  ;;  %v2533_v16 = vrot.slane %v2532_v10, 2 }
 0x65b   : > { %v2539_v32 = vadd.f32 %v2538_v58, %v2537_v36  ;;  %v4119_v49 = vadd.f32 %v2521_v4, %v2520_v12  ;;  %v2504_v55 = vadd.f32 %v2503_v8, %v2502_v1 }
 0x65c   : > { %v2544_v59 = vsel %vm2013_vm1, %v2456_v57, 0.0  ;;  %v2509_v11 = vsel %vm2013_vm1, %v2451_v56, 0.0 }
 0x65d   : > { %v2443_v46 = vpop.permute.xlu0 %2442  ;;  %v2429_v37 = vpop.permute.xlu1 %2428  ;;  %v2510_v41 = vrot.slane %v2509_v11, 4  ;;  %v2505_v36 = vrot.slane %v2504_v55, 2 }
 0x65e   : > { %v2457_v21 = vmul.f32 %v2429_v37, %v3951_v28  ;;  %v2459_v38 = vmul.f32 %v2443_v46, %v3966_v20  ;;  %v2498_v20 = vrot.slane %v2497_v24, 2  ;;  %v2529_v37 = vadd.f32 %v2528_v50, %v2527_v52 }
 0x660   : > { %v2551_v28 = vsel %vm2013_vm1, %v2457_v21, 0.0  ;;  %v2565_v33 = vsel %vm2013_vm1, %v2459_v38, 0.0  ;;  %v4122_v62 = vadd.f32 %v2498_v20, %v2497_v24 }
 0x661   : > { %v2813_v26 = vpop.permute.xlu0 %2812  ;;  %v2338_v39 = vpop.permute.xlu1 %2337  ;;  %v2552_v19 = vrot.slane %v2551_v28, 4  ;;  %v2566_v6 = vrot.slane %v2565_v33, 4 }
 0x662   : > { %2819 = vst.msk [vmem:[%s3997_s22] sm:$0xff] %vm2818_vm13, %v2813_v26  ;;  %v2444_v63 = vmul.f32 %v2338_v39, %v3763_v60  ;;  %v2511_v26 = vadd.f32 %v2510_v41, %v2509_v11  ;;  %v2500_v18 = vrot.slane %v4122_v62, 1 }
 0x663   : > { %2824 = vst.msk [vmem:[%s3997_s22] sm:$0xff] %vm2823_vm14, %v2821_v34  ;;  %v2553_v46 = vadd.f32 %v2552_v19, %v2551_v28  ;;  %v2540_v34 = vrot.slane %v2539_v32, 2  ;;  %v2567_v21 = vadd.f32 %v2566_v6, %v2565_v33  ;;  %v2608_v6 = vsel %vm2152_vm2, %v2529_v37, %v4119_v49 }
 0x664   : > { %v2460_v47 = vsel %vm2013_vm1, %v2444_v63, 0.0  ;;  %v2534_v63 = vadd.f32 %v2533_v16, %v2532_v10 }
 0x665   : > { %v2345_v14 = vpop.permute.xlu1 %2344  ;;  %v2461_v25 = vrot.slane %v2460_v47, 4  ;;  %v2541_v56 = vadd.f32 %v2540_v34, %v2539_v32 }
 0x666   : > { %v2445_v60 = vmul.f32 %v2345_v14, %v3805_v45  ;;  %v2545_v45 = vrot.slane %v2544_v59, 4  ;;  %v2535_v11 = vrot.slane %v2534_v63, 1 }
 0x667   : > { %v2462_v42 = vadd.f32 %v2461_v25, %v2460_v47  ;;  %v2568_v25 = vrot.slane %v2567_v21, 2  ;;  %v2542_v19 = vrot.slane %v2541_v56, 1 }
 0x668   : > { %v2467_v35 = vsel %vm2013_vm1, %v2445_v60, 0.0  ;;  %v2546_v29 = vadd.f32 %v2545_v45, %v2544_v59  ;;  %v2512_v60 = vrot.slane %v2511_v26, 2  ;;  %v2536_v16 = vadd.f32 %v2535_v11, %v2534_v63 }
 0x669   : > { %v2352_v5 = vpop.permute.xlu1 %2351  ;;  %v2468_v3 = vrot.slane %v2467_v35, 4  ;;  %v2463_v2 = vrot.slane %v2462_v42, 2  ;;  %v2569_v32 = vadd.f32 %v2568_v25, %v2567_v21 }
 0x66a   : > { %v2446_v13 = vmul.f32 %v2352_v5, %v3799_v40  ;;  %v2547_v57 = vrot.slane %v2546_v29, 2 }
 0x66b   : > { %v2469_v17 = vadd.f32 %v2468_v3, %v2467_v35  ;;  %v2464_v54 = vadd.f32 %v2463_v2, %v2462_v42  ;;  %v2506_v3 = vadd.f32 %v2505_v36, %v2504_v55 }
 0x66c   : > { %v2474_v53 = vsel %vm2013_vm1, %v2446_v13, 0.0  ;;  %v2548_v28 = vadd.f32 %v2547_v57, %v2546_v29  ;;  %v2513_v13 = vadd.f32 %v2512_v60, %v2511_v26  ;;  %v3013_v60 = vld [vmem:[%s4228_s4 + $0xb0] sm:$0xff] }
 0x66d   : > { %v2359_v61 = vpop.permute.xlu1 %2358  ;;  %v2470_v7 = vrot.slane %v2469_v17, 2  ;;  %v2475_v23 = vrot.slane %v2474_v53, 4  ;;  %v2465_v5 = vrot.slane %v2464_v54, 1 }
 0x66e   : > { %v2447_v40 = vmul.f32 %v2359_v61, %v3864_v9  ;;  %v2554_v9 = vrot.slane %v2553_v46, 2  ;;  %v2549_v42 = vrot.slane %v2548_v28, 1 }
 0x66f   : > { %v2476_v0 = vadd.f32 %v2475_v23, %v2474_v53  ;;  %v2471_v22 = vadd.f32 %v2470_v7, %v2469_v17  ;;  %v2466_v53 = vadd.f32 %v2465_v5, %v2464_v54  ;;  %v2507_v7 = vrot.slane %v2506_v3, 1 }
 0x670   : > { %v2481_v39 = vsel %vm2013_vm1, %v2447_v40, 0.0  ;;  %v2555_v35 = vadd.f32 %v2554_v9, %v2553_v46  ;;  %v2543_v46 = vadd.f32 %v2542_v19, %v2541_v56  ;;  %v2514_v40 = vrot.slane %v2513_v13, 1 }
 0x671   : > { %v2366_v48 = vpop.permute.xlu1 %2365  ;;  %v2477_v30 = vrot.slane %v2476_v0, 2  ;;  %v2482_v43 = vrot.slane %v2481_v39, 4  ;;  %v2472_v59 = vrot.slane %v2471_v22, 1 }
 0x672   : > { %v2448_v44 = vmul.f32 %v2366_v48, %v3838_v51  ;;  %v2556_v41 = vrot.slane %v2555_v35, 1  ;;  %v2570_v48 = vrot.slane %v2569_v32, 1  ;;  %v2515_v57 = vadd.f32 %v2514_v40, %v2513_v13  ;;  %v3320_v13 = vld [vmem:[%s3519_s15 + $0x8] sm:$0xff] }
 0x673   : > { %v2478_v47 = vadd.f32 %v2477_v30, %v2476_v0  ;;  %v2483_v14 = vadd.f32 %v2482_v43, %v2481_v39  ;;  %v2473_v20 = vadd.f32 %v2472_v59, %v2471_v22  ;;  %v2550_v0 = vadd.f32 %v2549_v42, %v2548_v28  ;;  %v3014_v59 = vld [vmem:[%s4228_s4 + $0xb8] sm:$0xff] }
 0x674   : > { %v2488_v12 = vsel %vm2013_vm1, %v2448_v44, 0.0  ;;  %v2501_v39 = vadd.f32 %v2500_v18, %v4122_v62  ;;  %v2557_v22 = vadd.f32 %v2556_v41, %v2555_v35  ;;  %v2609_v43 = vsel %vm2154_vm3, %v2536_v16, %v2608_v6  ;;  %v3016_v35 = vld [vmem:[%s4229_s5 + $0x5] ss:$0 sm:$0xff] }
 0x675   : > { %v2489_v52 = vrot.slane %v2488_v12, 4  ;;  %v2436_v24 = vpop.permute.xlu1 %2435  ;;  %v2484_v38 = vrot.slane %v2483_v14, 2  ;;  %v2479_v10 = vrot.slane %v2478_v47, 1  ;;  %v2601_v2 = vsel %vm2152_vm2, %v2473_v20, %v2466_v53 }
 0x676   : > { %v2458_v51 = vmul.f32 %v2436_v24, %v3961_v31  ;;  %v2508_v44 = vadd.f32 %v2507_v7, %v2506_v3  ;;  %v2610_v37 = vsel %vm2156_vm4, %v2543_v46, %v2609_v43 }
 0x677   : > { %v2490_v58 = vadd.f32 %v2489_v52, %v2488_v12  ;;  %v2485_v4 = vadd.f32 %v2484_v38, %v2483_v14  ;;  %v2480_v17 = vadd.f32 %v2479_v10, %v2478_v47  ;;  %v2611_v9 = vsel %vm2158_vm5, %v2550_v0, %v2610_v37 }
 0x678   : > { %v2558_v1 = vsel %vm2013_vm1, %v2458_v51, 0.0  ;;  %v2571_v47 = vadd.f32 %v2570_v48, %v2569_v32  ;;  %v2612_v14 = vsel %vm2160_vm6, %v2557_v22, %v2611_v9  ;;  %v2822_v52 = vcvt.s32.f32 %v3238_v27 }
 0x679   : > { %v2491_v50 = vrot.slane %v2490_v58, 2  ;;  %v2559_v45 = vrot.slane %v2558_v1, 4  ;;  %v2486_v33 = vrot.slane %v2485_v4, 1  ;;  %v2602_v55 = vsel %vm2154_vm3, %v2480_v17, %v2601_v2 }
 0x67a   : > { %v3231_v38 = vpack.c.bf16 %v3014_v59, %v3013_v60 }
 0x67b   : > { %v2492_v31 = vadd.f32 %v2491_v50, %v2490_v58  ;;  %v2560_v8 = vadd.f32 %v2559_v45, %v2558_v1  ;;  %v2487_v61 = vadd.f32 %v2486_v33, %v2485_v4  ;;  %v3321_v33 = vld [vmem:[%s3519_s15] sm:$0xff]  ;;  %s4183_s15 = scalar_lea.sflag [#allocation4], %s276_s20 }
 0x67c   : > { %3232 = vmatprep.subr.bf16.mxu0 %v3231_v38 }
 0x67d   : > { %v2493_v23 = vrot.slane %v2492_v31, 1  ;;  %v2561_v29 = vrot.slane %v2560_v8, 2  ;;  %v2603_v30 = vsel %vm2156_vm4, %v2487_v61, %v2602_v55  ;;  %3234 = vmatpush3.bf16.msra.mxu0 %v3231_v38 }
 0x67f   : > { %v2494_v34 = vadd.f32 %v2493_v23, %v2492_v31  ;;  %v2562_v26 = vadd.f32 %v2561_v29, %v2560_v8 }
 0x681   : > { %v2563_v63 = vrot.slane %v2562_v26, 1  ;;  %v2604_v49 = vsel %vm2158_vm5, %v2494_v34, %v2603_v30 }
 0x682   : > { %v2605_v21 = vsel %vm2160_vm6, %v2501_v39, %v2604_v49 }
 0x683   : > { %v2564_v62 = vadd.f32 %v2563_v63, %v2562_v26  ;;  %v2606_v54 = vsel %vm2162_vm7, %v2508_v44, %v2605_v21 }
 0x684   : > { %v2607_v12 = vsel %vm2164_vm8, %v2515_v57, %v2606_v54 }
 0x685   : > { %3173 = vmatprep.mubr.msk.f32.mxu1 %vm313_vm0, %v2607_v12  ;;  %v2613_v18 = vsel %vm2162_vm7, %v2564_v62, %v2612_v14 }
 0x686   : > { %v3292_v36 = vpop.permute.xlu1 %3291  ;;  %v2614_v56 = vsel %vm2164_vm8, %v2571_v47, %v2613_v18 }
 0x687   : > { %3174 = vmatmul.mubr.msk.f32.vlgmr.msra.gmra.mrb[14].mxu1 %vm313_vm0, %v2614_v56  ;;  %v3294_v5 = vunpack.i.h.bf16 %v3292_v36  ;;  %v3293_v4 = vunpack.i.l.bf16 %v3292_v36 }
 0x68a   : > { %v2815_v24 = vpop.permute.xlu1 %2814 }
 0x68b   : > { %2820 = vst.msk [vmem:[%s3997_s22 + $0x8] sm:$0xff] %vm2818_vm13, %v2815_v24 }
 0x68c   : > { %2825 = vst.msk [vmem:[%s3997_s22 + $0x8] sm:$0xff] %vm2823_vm14, %v2822_v52 }
 0x75a   : > { %v3175_v27 = vpop.f32.mrb[14].mxu1 }
 0x75b   : > { %v2691_v51 = vadd.f32 %v3175_v27, %v3008_v15  ;;  %v2685_v28 = vpop.f32.mrb[15].mxu1 }
 0x75c   : > { %v2686_v25 = vadd.f32 %v3008_v15, %v2685_v28 }
 0x75d   : > { %v2695_v58 = vmax.f32 %v2691_v51, 0.0 }
 0x75e   : > { %v2694_v10 = vmax.f32 %v2686_v25, 0.0 }
 0x760   : > { %3184 = vmatprep.mubr.msk.f32.mxu0 %vm313_vm0, %v2694_v10 }
 0x761   : > { %3185 = vmatmul.mubr.msk.f32.vlgmr.msra.gmra.mrb[16].mxu0 %vm313_vm0, %v2695_v58  ;;  %vm2834_vm0 = vcmask 367720  }
 0x834   : > { %v3186_v1 = vpop.f32.mrb[16].mxu0 }
 0x835   : > { %v2787_v11 = vadd.f32 %v3186_v1, %v3016_v35  ;;  %v2781_v3 = vpop.f32.mrb[17].mxu0 }
 0x836   : > { %v2782_v50 = vadd.f32 %v3016_v35, %v2781_v3 }
 0x837   : > { %v2807_v45 = vmul.f32 %v3294_v5, %v2787_v11 }
 0x838   : > { %v2806_v19 = vmul.f32 %v3293_v4, %v2782_v50 }
 0x839   : > { %v2809_v20 = vadd.f32 %v3320_v13, %v2807_v45 }
 0x83a   : > { %v2808_v42 = vadd.f32 %v3321_v33, %v2806_v19 }
 0x83b   : > { %2830 = vrot.lane.b32.xlu1 %v2809_v20, %s3392_s21 }
 0x83c   : > { %2828 = vrot.lane.b32.xlu0 %v2808_v42, %s3392_s21 }
 0x8ad   : > { %v2831_v17 = vpop.permute.xlu1 %2830 }
 0x8ae   : > { %2836 = vst.msk [vmem:[%s3997_s22 + $0x8] sm:$0xff] %vm2834_vm0, %v2831_v17  ;;  %v2829_v31 = vpop.permute.xlu0 %2828 }
 0x8af   : > { %2835 = vst.msk [vmem:[%s3997_s22] sm:$0xff] %vm2834_vm0, %v2829_v31 }
 0x8b0   : > { %3335 = shalt.err (!%p3332_p4)
}
 0x8b1   : > { %s3336_s20 = scalar_lea.hbm %s4175_s16, 256  ;;  %s3340_s14 = scalar_lea.hbm %s4230_s6, 512 }
 0x8b2   : > { %p3337_p7 = scmp.ne.s32.totalorder %s4175_s16, %s3336_s20  ;;  %p3341_p10 = scmp.lt.u32.totalorder %s4175_s16, %s4230_s6 }
 0x8b3   : > { %p3342_p11 = scmp.lt.u32.totalorder %s3340_s14, %s3336_s20  ;;  %p3344_p13 = scmp.lt.u32.totalorder %s3336_s20, %s4175_s16 }
 0x8b4   : > { %p3338_p8 = pnand %p3337_p7, %p3472_p5 }
 0x8b5   : > { %p3343_p12 = por %p3342_p11, %p3341_p10 }
 0x8b6   : > { %p3339_p9 = pneg %p3338_p8 }
 0x8b7   : > { %p3345_p0 = por %p3344_p13, %p3343_p12 }
 0x8b9   : > { %p3346_p1 = pnand %p3345_p0, %p3339_p9 }
 0x8bb   : > { %3349 = shalt.err (!%p3346_p1)
}
 0x8bc   : > { %s3394_s21 = smov 128   ;;  %s3395_s27 = smov 8  }
 0x8bd   : > { %3239 = dma.vmem_to_hbm [thread:$0]  (%p3472_p5), %s4177_s29, 256, %s4175_s16, %s4183_s15, %s3394_s21, %s3394_s21, %s3395_s27  }
 0x8be PF: > { %p3245_p2 = scmp.ge.s32.totalorder %s3384_s26, 2  ;;  %s2866_s30 = sand.u32 1, %s3372_s23  }
 0x8bf   : > { %s2867_s17 = scalar_lea.sflag [#allocation4], %s2866_s30 }
 0x8c0   : > { %p3242_p3 = pnand %p3245_p2, %p3476_p6 }
 0x8c2   : > { %3367 = dma.done.wait (!%p3242_p3), %s2867_s17, 256  }
 0x8c3   : > { %3369 = vsyncadd (!%p3242_p3), %s2867_s17, 4294967040  ;;  %p17_p4 = scmp.ge.s32.totalorder %s3459_s28, 4   ;;  %s4233_s23 = smov %s3376_s24 }
 0x8c4   : > { %s4234_s24 = smov %s3380_s25  ;;  %s4235_s25 = smov %s3470_s7 }
 0x8c5   : > { %s4236_s26 = smov %s3459_s28  ;;  %19 = sbr.rel (!%p17_p4) target bundleno = 5 (0x5), region = 95 }
 0x8cc   :  { %2872 = vsyncpa [#allocation4], 1 }
 0x8cd   :  { %2874 = vsyncpa [#allocation4 + $0x1], 1 }

</bundles_post_ra>
